<compile_context>
chip_gen: v6e
topology: v6e:2x2x1
jax: 0.10.0
libtpu: 0.0.40
codegen_flags: <defaults>
</compile_context>

<pallas_src>
import numpy as np
import jax
import jax.numpy as jnp
from jax.experimental import pallas as pl
from jax.experimental.pallas import tpu as pltpu

NEG_SLOPE = 0.01                 # F.leaky_relu default negative_slope
BN_EPS = 1e-5                    # nn.BatchNorm2d default eps
MATMUL_DTYPE = jnp.bfloat16      # matmul operands + intermediate activations


_VMEM_LIMIT = None


def _vmem_limit_bytes():
    """Per-generation VMEM request: physical capacity minus headroom, capped."""
    global _VMEM_LIMIT
    if _VMEM_LIMIT is None:
        try:
            cap = int(pltpu.get_tpu_info().vmem_capacity_bytes)
        except Exception:
            cap = 64 * 1024 * 1024
        _VMEM_LIMIT = int(max(32 * 1024 * 1024,
                              min(cap - 16 * 1024 * 1024, 100 * 1024 * 1024)))
    return _VMEM_LIMIT


def _pick_rows(total, bytes_per_row, vmem_budget, target=1024):
    """Largest divisor of `total` that is a multiple of 8 (or `total` itself),
    capped by a row target and a rough VMEM budget for the tiled operands."""
    cap = min(target, max(8, vmem_budget // max(1, 6 * bytes_per_row)))
    best = 0
    for d in range(1, total + 1):
        if total % d == 0 and d <= cap and (d % 8 == 0 or d == total):
            best = d
    # TODO(synk): replace exact-divisor tiling with pl.cdiv + masked tail tile.
    return best if best > 0 else total


# ---------------------------------------------------------------------------
# Kernel 1: ConvTranspose2d with kernel_size == stride == k, padding=0 ("us").
# One matmul per row tile: rows=(n,h), lanes=(w,ci) against a block-diagonal
# (W*Ci, k*W*k*Co) weight; output rows are already the k interleaved NHWC
# image rows, so NHWC is a free reshape (no per-phase grid axis, lane-dense).
def _us_kernel(x_ref, w_ref, b_ref, o_ref):
    acc = jnp.dot(x_ref[...], w_ref[...], preferred_element_type=jnp.float32)
    o_ref[...] = (acc + b_ref[...]).astype(o_ref.dtype)


def conv_transpose_upsample_nhwc(x_nchw, w, b, k):
    """ConvTranspose2d(C, C, kernel_size=k, stride=k, padding=0); NCHW in, NHWC(bf16) out."""
    N, Ci, H, W = x_nchw.shape
    Co = w.shape[1]
    L = k * W * k * Co
    x_rows = jnp.transpose(x_nchw, (0, 2, 3, 1)).reshape(N * H, W * Ci)
    x_rows = x_rows.astype(MATMUL_DTYPE)
    # wbig[(w_in, ci), (a, w_out, b, co)] = w[ci, co, a, b] * (w_in == w_out)
    eye = jnp.eye(W, dtype=w.dtype)
    wbig = jnp.einsum("xw,cdab->xcawbd", eye, w).reshape(W * Ci, L).astype(MATMUL_DTYPE)
    brow = jnp.tile(b, (k * W * k,)).reshape(1, L).astype(jnp.float32)

    vmem = _vmem_limit_bytes()
    tm = _pick_rows(N * H, (W * Ci + 2 * L) * 4, vmem)
    T = (N * H) // tm
    out = pl.pallas_call(
        _us_kernel,
        out_shape=jax.ShapeDtypeStruct((N * H, L), MATMUL_DTYPE),
        grid=(T,),
        in_specs=[pl.BlockSpec((tm, W * Ci), lambda t: (t, 0)),
                  pl.BlockSpec((W * Ci, L), lambda t: (0, 0)),
                  pl.BlockSpec((1, L), lambda t: (0, 0))],
        out_specs=pl.BlockSpec((tm, L), lambda t: (t, 0)),
        compiler_params=pltpu.CompilerParams(
            dimension_semantics=("parallel",), vmem_limit_bytes=vmem),
    )(x_rows, wbig, brow)
    # (N*H, k*W*k*Co) row-major == NHWC (N, H*k, W*k, Co): free reshape.
    return out.reshape(N, H * k, W * k, Co)


# ---------------------------------------------------------------------------
# Kernel 2/3: stride-1 ConvTranspose2d as K row-shifted banded matmuls, fused
# bias + LeakyReLU + single-pass training-mode BatchNorm partial statistics.
def _toeplitz_w(w, Wout, dtype):
    """Banded (Toeplitz-along-W) matrices for one stride-1 ConvTranspose2d stream.

    Returns (K, Wp*Ci, Wout*Co); rows ordered (w_in, ci), cols (w_out, co):
      T[dh, (w_in, ci), (w_out, co)] = w_flipped[dh, w_in - w_out, ci, co]."""
    Ci, Co, K, _ = w.shape
    Wp = Wout + K - 1
    wf = jnp.transpose(w[:, :, ::-1, ::-1], (2, 3, 0, 1))     # (dh, dw, ci, co)
    wi = jnp.arange(Wp)[:, None, None]
    wo = jnp.arange(Wout)[None, :, None]
    dw = jnp.arange(K)[None, None, :]
    band = (wi == wo + dw).astype(w.dtype)                    # (Wp, Wout, K)
    t = jnp.einsum("xwk,hkcd->hxcwd", band, wf)               # (K, Wp, Ci, Wout, Co)
    return t.reshape(K, Wp * Ci, Wout * Co).astype(dtype)


def _make_conv_kernel(nstreams, K, th, T, fuse_act_bn):
    def kernel(*refs):
        xs = refs[:nstreams]                     # (Hp, Wp*Ci) padded image, resident per n
        ws = refs[nstreams:2 * nstreams]         # (K, Wp*Ci, Wout*Co) banded weights
        b_ref = refs[2 * nstreams]               # (1, Wout*Co) f32 bias row
        o_ref = refs[2 * nstreams + 1]           # (th, Wout*Co)
        L = o_ref.shape[-1]

        acc = jnp.zeros((th, L), jnp.float32)
        for x_ref, w_ref in zip(xs, ws):
            for dh in range(K):
                if T > 1:
                    r0 = pl.program_id(1) * th
                    if th % 8 == 0:
                        r0 = pl.multiple_of(r0, 8)
                    xin = x_ref[pl.ds(r0 + dh, th), :]
                else:
                    xin = x_ref[dh:dh + th, :]
                acc += jnp.dot(xin, w_ref[dh], preferred_element_type=jnp.float32)
        z = acc + b_ref[...]
        if fuse_act_bn:
            z = jnp.where(z > 0, z, NEG_SLOPE * z)            # LeakyReLU, f32 VPU
        o_ref[...] = z.astype(o_ref.dtype)
        if fuse_act_bn:
            sum_ref = refs[2 * nstreams + 2]
            ssq_ref = refs[2 * nstreams + 3]
            sum_ref[...] = jnp.sum(z, axis=0, keepdims=True)
            ssq_ref[...] = jnp.sum(z * z, axis=0, keepdims=True)
    return kernel


def _bn_apply_kernel(z_ref, sc_ref, sh_ref, o_ref):
    z = z_ref[...].astype(jnp.float32)
    o_ref[...] = (z * sc_ref[...] + sh_ref[...]).astype(o_ref.dtype)


def conv_transpose_s1(streams_nhwc, w, b, pad, gamma=None, beta=None,
                      fuse_act_bn=False, out_dtype=None):
    """stride-1 ConvTranspose2d(padding=pad) over channel-split input streams
    [+ fused LeakyReLU + training-mode BatchNorm]; NHWC in, NHWC out.

    No im2col slab and no concatenated tensor ever touch HBM: each stream is
    zero-padded NHWC, and the kernel accumulates sum_{stream, dh} X[rows+dh] @ T[dh]
    with banded weights.  BN batch statistics come out as per-tile partials and
    the normalization is a second, Co-wide-only FMA kernel."""
    K = w.shape[2]
    pe = K - 1 - pad
    assert pe >= 0
    N, H, W = streams_nhwc[0].shape[:3]
    Hout = H + K - 1 - 2 * pad
    Wout = W + K - 1 - 2 * pad
    Hp, Wp = Hout + K - 1, Wout + K - 1
    Co = w.shape[1]
    L = Wout * Co

    cs = [int(a.shape[-1]) for a in streams_nhwc]
    offs = np.cumsum([0] + cs)
    x_pads, wts = [], []
    for s, a in enumerate(streams_nhwc):
        ap = jnp.pad(a.astype(MATMUL_DTYPE), ((0, 0), (pe, pe), (pe, pe), (0, 0)))
        x_pads.append(ap.reshape(N, Hp, Wp * cs[s]))          # lanes = (w, ci)
        wts.append(_toeplitz_w(w[offs[s]:offs[s + 1]], Wout, MATMUL_DTYPE))
    brow = jnp.tile(b, (Wout,)).reshape(1, L).astype(jnp.float32)

    vmem = _vmem_limit_bytes()
    # TODO(synk): the whole padded image stays VMEM-resident per n; for large
    # H*W*C switch to a haloed row-tile DMA (memory_space=pl.ANY) instead.
    th = _pick_rows(Hout, 4 * L, vmem)
    T = Hout // th
    nstreams = len(streams_nhwc)
    kern = _make_conv_kernel(nstreams, K, th, T, fuse_act_bn)

    in_specs = (
        [pl.BlockSpec((None, Hp, Wp * c), lambda n, t: (n, 0, 0)) for c in cs]
        + [pl.BlockSpec((K, Wp * c, L), lambda n, t: (0, 0, 0)) for c in cs]
        + [pl.BlockSpec((1, L), lambda n, t: (0, 0))])
    if fuse_act_bn:
        out_shape = (jax.ShapeDtypeStruct((N, Hout, L), MATMUL_DTYPE),
                     jax.ShapeDtypeStruct((N, T, L), jnp.float32),
                     jax.ShapeDtypeStruct((N, T, L), jnp.float32))
        out_specs = (pl.BlockSpec((None, th, L), lambda n, t: (n, t, 0)),
                     pl.BlockSpec((None, 1, L), lambda n, t: (n, t, 0)),
                     pl.BlockSpec((None, 1, L), lambda n, t: (n, t, 0)))
    else:
        odt = out_dtype if out_dtype is not None else MATMUL_DTYPE
        out_shape = jax.ShapeDtypeStruct((N, Hout, L), odt)
        out_specs = pl.BlockSpec((None, th, L), lambda n, t: (n, t, 0))

    res = pl.pallas_call(
        kern,
        out_shape=out_shape,
        grid=(N, T),
        in_specs=in_specs,
        out_specs=out_specs,
        compiler_params=pltpu.CompilerParams(
            dimension_semantics=("parallel", "parallel"), vmem_limit_bytes=vmem),
    )(*x_pads, *wts, brow)

    if not fuse_act_bn:
        return res.reshape(N, Hout, Wout, Co)

    z, psum, pssq = res
    # Tiny global reduction of per-tile partials (XLA): (N*T, Wout, Co) -> (Co,)
    cnt = float(N * Hout * Wout)
    ssum = psum.reshape(N * T, Wout, Co).sum(axis=(0, 1))
    sqsm = pssq.reshape(N * T, Wout, Co).sum(axis=(0, 1))
    mean = ssum / cnt
    # Biased batch variance, as PyTorch uses for normalization.
    # TODO(synk): for large/offset activations use a shifted two-pass variance.
    var = sqsm / cnt - mean * mean
    scale = gamma * jax.lax.rsqrt(var + BN_EPS)
    shift = beta - mean * scale
    scale_row = jnp.tile(scale, (Wout,)).reshape(1, L).astype(jnp.float32)
    shift_row = jnp.tile(shift, (Wout,)).reshape(1, L).astype(jnp.float32)

    odt = out_dtype if out_dtype is not None else MATMUL_DTYPE
    z2 = z.reshape(N * Hout, L)
    tm = _pick_rows(N * Hout, 8 * L, vmem)
    T2 = (N * Hout) // tm
    y = pl.pallas_call(
        _bn_apply_kernel,
        out_shape=jax.ShapeDtypeStruct((N * Hout, L), odt),
        grid=(T2,),
        in_specs=[pl.BlockSpec((tm, L), lambda t: (t, 0)),
                  pl.BlockSpec((1, L), lambda t: (0, 0)),
                  pl.BlockSpec((1, L), lambda t: (0, 0))],
        out_specs=pl.BlockSpec((tm, L), lambda t: (t, 0)),
        compiler_params=pltpu.CompilerParams(
            dimension_semantics=("parallel",), vmem_limit_bytes=vmem),
    )(z2, scale_row, shift_row)
    return y.reshape(N, Hout, Wout, Co)


# ---------------------------------------------------------------------------
# d_block parameters + forward
def init_params(key, inp, out, isLast, ksize, ds_ksize):
    half = inp // 2
    cu = inp if isLast else inp - out
    ks = jax.random.split(key, 6)
    s = 0.1
    p = {
        "us_w": s * jax.random.normal(ks[0], (cu, cu, ds_ksize, ds_ksize), jnp.float32),
        "us_b": s * jax.random.normal(ks[1], (cu,), jnp.float32),
        "conv2d_w": s * jax.random.normal(ks[2], (inp, half, ksize, ksize), jnp.float32),
        "conv2d_b": s * jax.random.normal(ks[3], (half,), jnp.float32),
        "bn2d_gamma": jnp.ones((half,), jnp.float32),      # PyTorch BN default init
        "bn2d_beta": jnp.zeros((half,), jnp.float32),
        "conv1d_w": s * jax.random.normal(ks[4], (half, out, ksize, ksize), jnp.float32),
        "conv1d_b": s * jax.random.normal(ks[5], (out,), jnp.float32),
    }
    if not isLast:
        p["bn1d_gamma"] = jnp.ones((out,), jnp.float32)
        p["bn1d_beta"] = jnp.zeros((out,), jnp.float32)
    return p


def d_block_forward(params, x, idx, size, isLast, skip, *, ksize, pad, ds_ksize, ds_stride):
    del idx, ksize                      # unused by the reference forward
    if not isLast:
        # TODO(synk): overlapping upsample (ds_ksize != ds_stride) not implemented.
        assert ds_ksize == ds_stride
    y = conv_transpose_upsample_nhwc(x, params["us_w"], params["us_b"], ds_ksize)
    assert y.shape[1:3] == tuple(size)  # output_size resolves exactly here
    streams = [y]
    if not isLast:
        # channel-split stream; never materialize the concatenated tensor
        streams.append(jnp.transpose(skip, (0, 2, 3, 1)))
    y = conv_transpose_s1(streams, params["conv2d_w"], params["conv2d_b"], pad,
                          gamma=params["bn2d_gamma"], beta=params["bn2d_beta"],
                          fuse_act_bn=True)
    if isLast:
        y = conv_transpose_s1([y], params["conv1d_w"], params["conv1d_b"], pad,
                              fuse_act_bn=False, out_dtype=x.dtype)
    else:
        y = conv_transpose_s1([y], params["conv1d_w"], params["conv1d_b"], pad,
                              gamma=params["bn1d_gamma"], beta=params["bn1d_beta"],
                              fuse_act_bn=True, out_dtype=x.dtype)
    return jnp.transpose(y, (0, 3, 1, 2))       # back to NCHW once, at the boundary


# ---------------------------------------------------------------------------
# Independent numpy reference (direct ConvTranspose2d definition) for checking
def np_conv_transpose(x, w, b, stride, padding):
    N, Ci, H, W = x.shape
    _, Co, KH, KW = w.shape
    Hfull = (H - 1) * stride + KH
    Wfull = (W - 1) * stride + KW
    y = np.zeros((N, Co, Hfull, Wfull), np.float64)
    for kh in range(KH):
        for kw in range(KW):
            contrib = np.einsum("nchw,cd->ndhw", x.astype(np.float64),
                                w[:, :, kh, kw].astype(np.float64))
            y[:, :, kh:kh + (H - 1) * stride + 1:stride,
                    kw:kw + (W - 1) * stride + 1:stride] += contrib
    y = y[:, :, padding:Hfull - padding, padding:Wfull - padding]
    return y + b.reshape(1, -1, 1, 1).astype(np.float64)


def np_bn_train(x, gamma, beta):
    mean = x.mean(axis=(0, 2, 3), keepdims=True)
    var = x.var(axis=(0, 2, 3), keepdims=True)            # biased, as PyTorch uses
    xn = (x - mean) / np.sqrt(var + BN_EPS)
    return xn * gamma.reshape(1, -1, 1, 1) + beta.reshape(1, -1, 1, 1)


def np_leaky(x):
    return np.where(x > 0, x, NEG_SLOPE * x)


def np_d_block_forward(p, x, size, isLast, skip, *, pad, ds_ksize, ds_stride):
    stride = ds_ksize if isLast else ds_stride
    y = np_conv_transpose(x, p["us_w"], p["us_b"], stride, 0)
    assert y.shape[2:] == tuple(size)
    if not isLast:
        y = np.concatenate([y, skip], axis=1)
    y = np_bn_train(np_leaky(np_conv_transpose(y, p["conv2d_w"], p["conv2d_b"], 1, pad)),
                    p["bn2d_gamma"], p["bn2d_beta"])
    if isLast:
        y = np_conv_transpose(y, p["conv1d_w"], p["conv1d_b"], 1, pad)
    else:
        y = np_bn_train(np_leaky(np_conv_transpose(y, p["conv1d_w"], p["conv1d_b"], 1, pad)),
                        p["bn1d_gamma"], p["bn1d_beta"])
    return y


# ---------------------------------------------------------------------------
if __name__ == "__main__":
    inp, out = 8, 4
    ksize, pad = 3, 1
    ds_ksize, ds_stride = 2, 2
    N, H, W = 2, 8, 8
    size = (H * 2, W * 2)
    # Tolerance reflects bf16 matmul operands / bf16 intermediate activations.
    rtol = atol = 3e-2

    key = jax.random.PRNGKey(0)
    kx, kskip, kp1, kx2, kp2 = jax.random.split(key, 5)

    # --- not-isLast path ---
    x = jax.random.normal(kx, (N, inp - out, H, W), jnp.float32)
    skip = jax.random.normal(kskip, (N, out, size[0], size[1]), jnp.float32)
    params = init_params(kp1, inp, out, False, ksize, ds_ksize)

    fwd = jax.jit(lambda p, a, s: d_block_forward(
        p, a, None, size, False, s,
        ksize=ksize, pad=pad, ds_ksize=ds_ksize, ds_stride=ds_stride))
    y = jax.block_until_ready(fwd(params, x, skip))

    p_np = {k: np.asarray(v) for k, v in params.items()}
    y_ref = np_d_block_forward(p_np, np.asarray(x), size, False, np.asarray(skip),
                               pad=pad, ds_ksize=ds_ksize, ds_stride=ds_stride)
    np.testing.assert_allclose(np.asarray(y), y_ref, rtol=rtol, atol=atol)

    # --- isLast path ---
    x2 = jax.random.normal(kx2, (N, inp, H, W), jnp.float32)
    params2 = init_params(kp2, inp, out, True, ksize, ds_ksize)
    fwd_last = jax.jit(lambda p, a: d_block_forward(
        p, a, None, size, True, None,
        ksize=ksize, pad=pad, ds_ksize=ds_ksize, ds_stride=ds_stride))
    y2 = jax.block_until_ready(fwd_last(params2, x2))

    p2_np = {k: np.asarray(v) for k, v in params2.items()}
    y2_ref = np_d_block_forward(p2_np, np.asarray(x2), size, True, None,
                                pad=pad, ds_ksize=ds_ksize, ds_stride=ds_stride)
    np.testing.assert_allclose(np.asarray(y2), y2_ref, rtol=rtol, atol=atol)

    print("KERNEL_OK")
</pallas_src>

<mosaic_0001>
module attributes {stable_mosaic.version = 11 : i64} {
  func.func @_us_kernel(%arg0: i32, %arg1: memref<16x32xbf16, #tpu.memory_space<vmem>>, %arg2: memref<32x128xbf16, #tpu.memory_space<vmem>>, %arg3: memref<1x128xf32, #tpu.memory_space<vmem>>, %arg4: memref<16x128xbf16, #tpu.memory_space<vmem>>) attributes {dimension_semantics = [#tpu.dimension_semantics<parallel>], iteration_bounds = array<i64: 1>, scalar_prefetch = 0 : i64, scratch_operands = 0 : i64, tpu.core_type = #tpu.core_type<tc>, window_params = [{transform_indices = @transform_0, window_bounds = array<i64: 16, 32>}, {pipeline_mode = #tpu.pipeline_mode<synchronous>, transform_indices = @transform_1, window_bounds = array<i64: 32, 128>}, {pipeline_mode = #tpu.pipeline_mode<synchronous>, transform_indices = @transform_2, window_bounds = array<i64: 1, 128>}, {transform_indices = @transform_3, window_bounds = array<i64: 16, 128>}]} {
    %c0 = arith.constant 0 : index
    %c0_0 = arith.constant 0 : index
    %0 = vector.load %arg1[%c0, %c0_0] : memref<16x32xbf16, #tpu.memory_space<vmem>>, vector<16x32xbf16>
    %c0_1 = arith.constant 0 : index
    %c0_2 = arith.constant 0 : index
    %1 = vector.load %arg2[%c0_1, %c0_2] : memref<32x128xbf16, #tpu.memory_space<vmem>>, vector<32x128xbf16>
    %cst = arith.constant dense<0.000000e+00> : vector<16x128xf32>
    %2 = tpu.matmul %0, %1, %cst {dimension_numbers = #tpu.dot_dimension_numbers<[1], [0], [0], [1], [0, 0, 1, 1], [], []>} : vector<16x32xbf16>, vector<32x128xbf16>, vector<16x128xf32> -> vector<16x128xf32>
    %c0_3 = arith.constant 0 : index
    %c0_4 = arith.constant 0 : index
    %3 = vector.load %arg3[%c0_3, %c0_4] : memref<1x128xf32, #tpu.memory_space<vmem>>, vector<1x128xf32>
    %4 = vector.broadcast %3 : vector<1x128xf32> to vector<16x128xf32>
    %5 = arith.addf %2, %4 : vector<16x128xf32>
    %6 = arith.truncf %5 : vector<16x128xf32> to vector<16x128xbf16>
    %c0_5 = arith.constant 0 : index
    %c0_6 = arith.constant 0 : index
    %7 = vector.load %arg4[%c0_5, %c0_6] : memref<16x128xbf16, #tpu.memory_space<vmem>>, vector<16x128xbf16>
    tpu.vector_store %arg4[%c0_5, %c0_6], %6 {strides = array<i32>} : memref<16x128xbf16, #tpu.memory_space<vmem>>, vector<16x128xbf16>,
    return
  }
  func.func @transform_0(%arg0: i32) -> (i32, i32) {
    %c0_i32 = arith.constant 0 : i32
    %c0_i32_0 = arith.constant 0 : i32
    return %arg0, %c0_i32 : i32, i32
  }
  func.func @transform_1(%arg0: i32) -> (i32, i32) {
    %c0_i32 = arith.constant 0 : i32
    %c0_i32_0 = arith.constant 0 : i32
    %c0_i32_1 = arith.constant 0 : i32
    return %c0_i32, %c0_i32_0 : i32, i32
  }
  func.func @transform_2(%arg0: i32) -> (i32, i32) {
    %c0_i32 = arith.constant 0 : i32
    %c0_i32_0 = arith.constant 0 : i32
    %c0_i32_1 = arith.constant 0 : i32
    return %c0_i32, %c0_i32_0 : i32, i32
  }
  func.func @transform_3(%arg0: i32) -> (i32, i32) {
    %c0_i32 = arith.constant 0 : i32
    %c0_i32_0 = arith.constant 0 : i32
    return %arg0, %c0_i32 : i32, i32
  }
}

module attributes {stable_mosaic.version = 11 : i64} {
  func.func @kernel(%arg0: i32, %arg1: i32, %arg2: memref<1x18x72xbf16, #tpu.memory_space<vmem>>, %arg3: memref<1x18x72xbf16, #tpu.memory_space<vmem>>, %arg4: memref<3x72x64xbf16, #tpu.memory_space<vmem>>, %arg5: memref<3x72x64xbf16, #tpu.memory_space<vmem>>, %arg6: memref<1x64xf32, #tpu.memory_space<vmem>>, %arg7: memref<1x16x64xbf16, #tpu.memory_space<vmem>>, %arg8: memref<1x1x64xf32, #tpu.memory_space<vmem>>, %arg9: memref<1x1x64xf32, #tpu.memory_space<vmem>>) attributes {dimension_semantics = [#tpu.dimension_semantics<parallel>, #tpu.dimension_semantics<parallel>], iteration_bounds = array<i64: 2, 1>, scalar_prefetch = 0 : i64, scratch_operands = 0 : i64, tpu.core_type = #tpu.core_type<tc>, window_params = [{transform_indices = @transform_0, window_bounds = array<i64: 1, 18, 72>}, {transform_indices = @transform_1, window_bounds = array<i64: 1, 18, 72>}, {pipeline_mode = #tpu.pipeline_mode<synchronous>, transform_indices = @transform_2, window_bounds = array<i64: 3, 72, 64>}, {pipeline_mode = #tpu.pipeline_mode<synchronous>, transform_indices = @transform_3, window_bounds = array<i64: 3, 72, 64>}, {pipeline_mode = #tpu.pipeline_mode<synchronous>, transform_indices = @transform_4, window_bounds = array<i64: 1, 64>}, {transform_indices = @transform_5, window_bounds = array<i64: 1, 16, 64>}, {transform_indices = @transform_6, window_bounds = array<i64: 1, 1, 64>}, {transform_indices = @transform_7, window_bounds = array<i64: 1, 1, 64>}]} {
    %cst = arith.constant 0.000000e+00 : f32
    %0 = vector.broadcast %cst : f32 to vector<16x64xf32>
    %c0 = arith.constant 0 : index
    %c0_0 = arith.constant 0 : index
    %c0_1 = arith.constant 0 : index
    %1 = vector.load %arg2[%c0, %c0_0, %c0_1] : memref<1x18x72xbf16, #tpu.memory_space<vmem>>, vector<1x16x72xbf16>
    %2 = vector.shape_cast %1 : vector<1x16x72xbf16> to vector<16x72xbf16>
    %c0_2 = arith.constant 0 : index
    %c0_3 = arith.constant 0 : index
    %c0_4 = arith.constant 0 : index
    %3 = vector.load %arg4[%c0_2, %c0_3, %c0_4] : memref<3x72x64xbf16, #tpu.memory_space<vmem>>, vector<1x72x64xbf16>
    %4 = vector.shape_cast %3 : vector<1x72x64xbf16> to vector<72x64xbf16>
    %cst_5 = arith.constant dense<0.000000e+00> : vector<16x64xf32>
    %5 = tpu.matmul %2, %4, %cst_5 {dimension_numbers = #tpu.dot_dimension_numbers<[1], [0], [0], [1], [0, 0, 1, 1], [], []>} : vector<16x72xbf16>, vector<72x64xbf16>, vector<16x64xf32> -> vector<16x64xf32>
    %6 = arith.addf %0, %5 : vector<16x64xf32>
    %c0_6 = arith.constant 0 : index
    %c1 = arith.constant 1 : index
    %c0_7 = arith.constant 0 : index
    %7 = vector.load %arg2[%c0_6, %c1, %c0_7] : memref<1x18x72xbf16, #tpu.memory_space<vmem>>, vector<1x16x72xbf16>
    %8 = vector.shape_cast %7 : vector<1x16x72xbf16> to vector<16x72xbf16>
    %c1_8 = arith.constant 1 : index
    %c0_9 = arith.constant 0 : index
    %c0_10 = arith.constant 0 : index
    %9 = vector.load %arg4[%c1_8, %c0_9, %c0_10] : memref<3x72x64xbf16, #tpu.memory_space<vmem>>, vector<1x72x64xbf16>
    %10 = vector.shape_cast %9 : vector<1x72x64xbf16> to vector<72x64xbf16>
    %cst_11 = arith.constant dense<0.000000e+00> : vector<16x64xf32>
    %11 = tpu.matmul %8, %10, %cst_11 {dimension_numbers = #tpu.dot_dimension_numbers<[1], [0], [0], [1], [0, 0, 1, 1], [], []>} : vector<16x72xbf16>, vector<72x64xbf16>, vector<16x64xf32> -> vector<16x64xf32>
    %12 = arith.addf %6, %11 : vector<16x64xf32>
    %c0_12 = arith.constant 0 : index
    %c2 = arith.constant 2 : index
    %c0_13 = arith.constant 0 : index
    %13 = vector.load %arg2[%c0_12, %c2, %c0_13] : memref<1x18x72xbf16, #tpu.memory_space<vmem>>, vector<1x16x72xbf16>
    %14 = vector.shape_cast %13 : vector<1x16x72xbf16> to vector<16x72xbf16>
    %c2_14 = arith.constant 2 : index
    %c0_15 = arith.constant 0 : index
    %c0_16 = arith.constant 0 : index
    %15 = vector.load %arg4[%c2_14, %c0_15, %c0_16] : memref<3x72x64xbf16, #tpu.memory_space<vmem>>, vector<1x72x64xbf16>
    %16 = vector.shape_cast %15 : vector<1x72x64xbf16> to vector<72x64xbf16>
    %cst_17 = arith.constant dense<0.000000e+00> : vector<16x64xf32>
    %17 = tpu.matmul %14, %16, %cst_17 {dimension_numbers = #tpu.dot_dimension_numbers<[1], [0], [0], [1], [0, 0, 1, 1], [], []>} : vector<16x72xbf16>, vector<72x64xbf16>, vector<16x64xf32> -> vector<16x64xf32>
    %18 = arith.addf %12, %17 : vector<16x64xf32>
    %c0_18 = arith.constant 0 : index
    %c0_19 = arith.constant 0 : index
    %c0_20 = arith.constant 0 : index
    %19 = vector.load %arg3[%c0_18, %c0_19, %c0_20] : memref<1x18x72xbf16, #tpu.memory_space<vmem>>, vector<1x16x72xbf16>
    %20 = vector.shape_cast %19 : vector<1x16x72xbf16> to vector<16x72xbf16>
    %c0_21 = arith.constant 0 : index
    %c0_22 = arith.constant 0 : index
    %c0_23 = arith.constant 0 : index
    %21 = vector.load %arg5[%c0_21, %c0_22, %c0_23] : memref<3x72x64xbf16, #tpu.memory_space<vmem>>, vector<1x72x64xbf16>
    %22 = vector.shape_cast %21 : vector<1x72x64xbf16> to vector<72x64xbf16>
    %cst_24 = arith.constant dense<0.000000e+00> : vector<16x64xf32>
    %23 = tpu.matmul %20, %22, %cst_24 {dimension_numbers = #tpu.dot_dimension_numbers<[1], [0], [0], [1], [0, 0, 1, 1], [], []>} : vector<16x72xbf16>, vector<72x64xbf16>, vector<16x64xf32> -> vector<16x64xf32>
    %24 = arith.addf %18, %23 : vector<16x64xf32>
    %c0_25 = arith.constant 0 : index
    %c1_26 = arith.constant 1 : index
    %c0_27 = arith.constant 0 : index
    %25 = vector.load %arg3[%c0_25, %c1_26, %c0_27] : memref<1x18x72xbf16, #tpu.memory_space<vmem>>, vector<1x16x72xbf16>
    %26 = vector.shape_cast %25 : vector<1x16x72xbf16> to vector<16x72xbf16>
    %c1_28 = arith.constant 1 : index
    %c0_29 = arith.constant 0 : index
    %c0_30 = arith.constant 0 : index
    %27 = vector.load %arg5[%c1_28, %c0_29, %c0_30] : memref<3x72x64xbf16, #tpu.memory_space<vmem>>, vector<1x72x64xbf16>
    %28 = vector.shape_cast %27 : vector<1x72x64xbf16> to vector<72x64xbf16>
    %cst_31 = arith.constant dense<0.000000e+00> : vector<16x64xf32>
    %29 = tpu.matmul %26, %28, %cst_31 {dimension_numbers = #tpu.dot_dimension_numbers<[1], [0], [0], [1], [0, 0, 1, 1], [], []>} : vector<16x72xbf16>, vector<72x64xbf16>, vector<16x64xf32> -> vector<16x64xf32>
    %30 = arith.addf %24, %29 : vector<16x64xf32>
    %c0_32 = arith.constant 0 : index
    %c2_33 = arith.constant 2 : index
    %c0_34 = arith.constant 0 : index
    %31 = vector.load %arg3[%c0_32, %c2_33, %c0_34] : memref<1x18x72xbf16, #tpu.memory_space<vmem>>, vector<1x16x72xbf16>
    %32 = vector.shape_cast %31 : vector<1x16x72xbf16> to vector<16x72xbf16>
    %c2_35 = arith.constant 2 : index
    %c0_36 = arith.constant 0 : index
    %c0_37 = arith.constant 0 : index
    %33 = vector.load %arg5[%c2_35, %c0_36, %c0_37] : memref<3x72x64xbf16, #tpu.memory_space<vmem>>, vector<1x72x64xbf16>
    %34 = vector.shape_cast %33 : vector<1x72x64xbf16> to vector<72x64xbf16>
    %cst_38 = arith.constant dense<0.000000e+00> : vector<16x64xf32>
    %35 = tpu.matmul %32, %34, %cst_38 {dimension_numbers = #tpu.dot_dimension_numbers<[1], [0], [0], [1], [0, 0, 1, 1], [], []>} : vector<16x72xbf16>, vector<72x64xbf16>, vector<16x64xf32> -> vector<16x64xf32>
    %36 = arith.addf %30, %35 : vector<16x64xf32>
    %c0_39 = arith.constant 0 : index
    %c0_40 = arith.constant 0 : index
    %37 = vector.load %arg6[%c0_39, %c0_40] : memref<1x64xf32, #tpu.memory_space<vmem>>, vector<1x64xf32>
    %38 = vector.broadcast %37 : vector<1x64xf32> to vector<16x64xf32>
    %39 = arith.addf %36, %38 : vector<16x64xf32>
    %cst_41 = arith.constant 0.000000e+00 : f32
    %40 = vector.broadcast %cst_41 : f32 to vector<16x64xf32>
    %41 = arith.cmpf ogt, %39, %40 : vector<16x64xf32>
    %cst_42 = arith.constant 0.00999999977 : f32
    %42 = vector.broadcast %cst_42 : f32 to vector<16x64xf32>
    %43 = arith.mulf %42, %39 : vector<16x64xf32>
    %44 = arith.select %41, %39, %43 : vector<16x64xi1>, vector<16x64xf32>
    %45 = arith.truncf %44 : vector<16x64xf32> to vector<16x64xbf16>
    %c0_43 = arith.constant 0 : index
    %c0_44 = arith.constant 0 : index
    %c0_45 = arith.constant 0 : index
    %46 = vector.load %arg7[%c0_43, %c0_44, %c0_45] : memref<1x16x64xbf16, #tpu.memory_space<vmem>>, vector<1x16x64xbf16>
    %47 = vector.shape_cast %46 : vector<1x16x64xbf16> to vector<16x64xbf16>
    %48 = vector.shape_cast %45 : vector<16x64xbf16> to vector<1x16x64xbf16>
    tpu.vector_store %arg7[%c0_43, %c0_44, %c0_45], %48 {strides = array<i32>} : memref<1x16x64xbf16, #tpu.memory_space<vmem>>, vector<1x16x64xbf16>,
    %cst_46 = arith.constant dense<0.000000e+00> : vector<64xf32>
    %49 = vector.multi_reduction <add>, %44, %cst_46 [0] : vector<16x64xf32> to vector<64xf32>
    %50 = vector.shape_cast %49 : vector<64xf32> to vector<1x64xf32>
    %c0_47 = arith.constant 0 : index
    %c0_48 = arith.constant 0 : index
    %c0_49 = arith.constant 0 : index
    %51 = vector.load %arg8[%c0_47, %c0_48, %c0_49] : memref<1x1x64xf32, #tpu.memory_space<vmem>>, vector<1x1x64xf32>
    %52 = vector.shape_cast %51 : vector<1x1x64xf32> to vector<1x64xf32>
    %53 = vector.shape_cast %50 : vector<1x64xf32> to vector<1x1x64xf32>
    tpu.vector_store %arg8[%c0_47, %c0_48, %c0_49], %53 {strides = array<i32>} : memref<1x1x64xf32, #tpu.memory_space<vmem>>, vector<1x1x64xf32>,
    %54 = arith.mulf %44, %44 : vector<16x64xf32>
    %cst_50 = arith.constant dense<0.000000e+00> : vector<64xf32>
    %55 = vector.multi_reduction <add>, %54, %cst_50 [0] : vector<16x64xf32> to vector<64xf32>
    %56 = vector.shape_cast %55 : vector<64xf32> to vector<1x64xf32>
    %c0_51 = arith.constant 0 : index
    %c0_52 = arith.constant 0 : index
    %c0_53 = arith.constant 0 : index
    %57 = vector.load %arg9[%c0_51, %c0_52, %c0_53] : memref<1x1x64xf32, #tpu.memory_space<vmem>>, vector<1x1x64xf32>
    %58 = vector.shape_cast %57 : vector<1x1x64xf32> to vector<1x64xf32>
    %59 = vector.shape_cast %56 : vector<1x64xf32> to vector<1x1x64xf32>
    tpu.vector_store %arg9[%c0_51, %c0_52, %c0_53], %59 {strides = array<i32>} : memref<1x1x64xf32, #tpu.memory_space<vmem>>, vector<1x1x64xf32>,
    return
  }
  func.func @transform_0(%arg0: i32, %arg1: i32) -> (i32, i32, i32) {
    %c0_i32 = arith.constant 0 : i32
    %c0_i32_0 = arith.constant 0 : i32
    %c0_i32_1 = arith.constant 0 : i32
    return %arg0, %c0_i32, %c0_i32_0 : i32, i32, i32
  }
  func.func @transform_1(%arg0: i32, %arg1: i32) -> (i32, i32, i32) {
    %c0_i32 = arith.constant 0 : i32
    %c0_i32_0 = arith.constant 0 : i32
    %c0_i32_1 = arith.constant 0 : i32
    return %arg0, %c0_i32, %c0_i32_0 : i32, i32, i32
  }
  func.func @transform_2(%arg0: i32, %arg1: i32) -> (i32, i32, i32) {
    %c0_i32 = arith.constant 0 : i32
    %c0_i32_0 = arith.constant 0 : i32
    %c0_i32_1 = arith.constant 0 : i32
    %c0_i32_2 = arith.constant 0 : i32
    return %c0_i32, %c0_i32_0, %c0_i32_1 : i32, i32, i32
  }
  func.func @transform_3(%arg0: i32, %arg1: i32) -> (i32, i32, i32) {
    %c0_i32 = arith.constant 0 : i32
    %c0_i32_0 = arith.constant 0 : i32
    %c0_i32_1 = arith.constant 0 : i32
    %c0_i32_2 = arith.constant 0 : i32
    return %c0_i32, %c0_i32_0, %c0_i32_1 : i32, i32, i32
  }
  func.func @transform_4(%arg0: i32, %arg1: i32) -> (i32, i32) {
    %c0_i32 = arith.constant 0 : i32
    %c0_i32_0 = arith.constant 0 : i32
    %c0_i32_1 = arith.constant 0 : i32
    return %c0_i32, %c0_i32_0 : i32, i32
  }
  func.func @transform_5(%arg0: i32, %arg1: i32) -> (i32, i32, i32) {
    %c0_i32 = arith.constant 0 : i32
    %c0_i32_0 = arith.constant 0 : i32
    return %arg0, %arg1, %c0_i32 : i32, i32, i32
  }
  func.func @transform_6(%arg0: i32, %arg1: i32) -> (i32, i32, i32) {
    %c0_i32 = arith.constant 0 : i32
    %c0_i32_0 = arith.constant 0 : i32
    return %arg0, %arg1, %c0_i32 : i32, i32, i32
  }
  func.func @transform_7(%arg0: i32, %arg1: i32) -> (i32, i32, i32) {
    %c0_i32 = arith.constant 0 : i32
    %c0_i32_0 = arith.constant 0 : i32
    return %arg0, %arg1, %c0_i32 : i32, i32, i32
  }
}

module attributes {stable_mosaic.version = 11 : i64} {
  func.func @_bn_apply_kernel(%arg0: i32, %arg1: memref<32x64xbf16, #tpu.memory_space<vmem>>, %arg2: memref<1x64xf32, #tpu.memory_space<vmem>>, %arg3: memref<1x64xf32, #tpu.memory_space<vmem>>, %arg4: memref<32x64xbf16, #tpu.memory_space<vmem>>) attributes {dimension_semantics = [#tpu.dimension_semantics<parallel>], iteration_bounds = array<i64: 1>, scalar_prefetch = 0 : i64, scratch_operands = 0 : i64, tpu.core_type = #tpu.core_type<tc>, window_params = [{transform_indices = @transform_0, window_bounds = array<i64: 32, 64>}, {pipeline_mode = #tpu.pipeline_mode<synchronous>, transform_indices = @transform_1, window_bounds = array<i64: 1, 64>}, {pipeline_mode = #tpu.pipeline_mode<synchronous>, transform_indices = @transform_2, window_bounds = array<i64: 1, 64>}, {transform_indices = @transform_3, window_bounds = array<i64: 32, 64>}]} {
    %c0 = arith.constant 0 : index
    %c0_0 = arith.constant 0 : index
    %0 = vector.load %arg1[%c0, %c0_0] : memref<32x64xbf16, #tpu.memory_space<vmem>>, vector<32x64xbf16>
    %1 = arith.extf %0 : vector<32x64xbf16> to vector<32x64xf32>
    %c0_1 = arith.constant 0 : index
    %c0_2 = arith.constant 0 : index
    %2 = vector.load %arg2[%c0_1, %c0_2] : memref<1x64xf32, #tpu.memory_space<vmem>>, vector<1x64xf32>
    %3 = vector.broadcast %2 : vector<1x64xf32> to vector<32x64xf32>
    %4 = arith.mulf %1, %3 : vector<32x64xf32>
    %c0_3 = arith.constant 0 : index
    %c0_4 = arith.constant 0 : index
    %5 = vector.load %arg3[%c0_3, %c0_4] : memref<1x64xf32, #tpu.memory_space<vmem>>, vector<1x64xf32>
    %6 = vector.broadcast %5 : vector<1x64xf32> to vector<32x64xf32>
    %7 = arith.addf %4, %6 : vector<32x64xf32>
    %8 = arith.truncf %7 : vector<32x64xf32> to vector<32x64xbf16>
    %c0_5 = arith.constant 0 : index
    %c0_6 = arith.constant 0 : index
    %9 = vector.load %arg4[%c0_5, %c0_6] : memref<32x64xbf16, #tpu.memory_space<vmem>>, vector<32x64xbf16>
    tpu.vector_store %arg4[%c0_5, %c0_6], %8 {strides = array<i32>} : memref<32x64xbf16, #tpu.memory_space<vmem>>, vector<32x64xbf16>,
    return
  }
  func.func @transform_0(%arg0: i32) -> (i32, i32) {
    %c0_i32 = arith.constant 0 : i32
    %c0_i32_0 = arith.constant 0 : i32
    return %arg0, %c0_i32 : i32, i32
  }
  func.func @transform_1(%arg0: i32) -> (i32, i32) {
    %c0_i32 = arith.constant 0 : i32
    %c0_i32_0 = arith.constant 0 : i32
    %c0_i32_1 = arith.constant 0 : i32
    return %c0_i32, %c0_i32_0 : i32, i32
  }
  func.func @transform_2(%arg0: i32) -> (i32, i32) {
    %c0_i32 = arith.constant 0 : i32
    %c0_i32_0 = arith.constant 0 : i32
    %c0_i32_1 = arith.constant 0 : i32
    return %c0_i32, %c0_i32_0 : i32, i32
  }
  func.func @transform_3(%arg0: i32) -> (i32, i32) {
    %c0_i32 = arith.constant 0 : i32
    %c0_i32_0 = arith.constant 0 : i32
    return %arg0, %c0_i32 : i32, i32
  }
}

module attributes {stable_mosaic.version = 11 : i64} {
  func.func @kernel(%arg0: i32, %arg1: i32, %arg2: memref<1x18x72xbf16, #tpu.memory_space<vmem>>, %arg3: memref<3x72x64xbf16, #tpu.memory_space<vmem>>, %arg4: memref<1x64xf32, #tpu.memory_space<vmem>>, %arg5: memref<1x16x64xbf16, #tpu.memory_space<vmem>>, %arg6: memref<1x1x64xf32, #tpu.memory_space<vmem>>, %arg7: memref<1x1x64xf32, #tpu.memory_space<vmem>>) attributes {dimension_semantics = [#tpu.dimension_semantics<parallel>, #tpu.dimension_semantics<parallel>], iteration_bounds = array<i64: 2, 1>, scalar_prefetch = 0 : i64, scratch_operands = 0 : i64, tpu.core_type = #tpu.core_type<tc>, window_params = [{transform_indices = @transform_0, window_bounds = array<i64: 1, 18, 72>}, {pipeline_mode = #tpu.pipeline_mode<synchronous>, transform_indices = @transform_1, window_bounds = array<i64: 3, 72, 64>}, {pipeline_mode = #tpu.pipeline_mode<synchronous>, transform_indices = @transform_2, window_bounds = array<i64: 1, 64>}, {transform_indices = @transform_3, window_bounds = array<i64: 1, 16, 64>}, {transform_indices = @transform_4, window_bounds = array<i64: 1, 1, 64>}, {transform_indices = @transform_5, window_bounds = array<i64: 1, 1, 64>}]} {
    %cst = arith.constant 0.000000e+00 : f32
    %0 = vector.broadcast %cst : f32 to vector<16x64xf32>
    %c0 = arith.constant 0 : index
    %c0_0 = arith.constant 0 : index
    %c0_1 = arith.constant 0 : index
    %1 = vector.load %arg2[%c0, %c0_0, %c0_1] : memref<1x18x72xbf16, #tpu.memory_space<vmem>>, vector<1x16x72xbf16>
    %2 = vector.shape_cast %1 : vector<1x16x72xbf16> to vector<16x72xbf16>
    %c0_2 = arith.constant 0 : index
    %c0_3 = arith.constant 0 : index
    %c0_4 = arith.constant 0 : index
    %3 = vector.load %arg3[%c0_2, %c0_3, %c0_4] : memref<3x72x64xbf16, #tpu.memory_space<vmem>>, vector<1x72x64xbf16>
    %4 = vector.shape_cast %3 : vector<1x72x64xbf16> to vector<72x64xbf16>
    %cst_5 = arith.constant dense<0.000000e+00> : vector<16x64xf32>
    %5 = tpu.matmul %2, %4, %cst_5 {dimension_numbers = #tpu.dot_dimension_numbers<[1], [0], [0], [1], [0, 0, 1, 1], [], []>} : vector<16x72xbf16>, vector<72x64xbf16>, vector<16x64xf32> -> vector<16x64xf32>
    %6 = arith.addf %0, %5 : vector<16x64xf32>
    %c0_6 = arith.constant 0 : index
    %c1 = arith.constant 1 : index
    %c0_7 = arith.constant 0 : index
    %7 = vector.load %arg2[%c0_6, %c1, %c0_7] : memref<1x18x72xbf16, #tpu.memory_space<vmem>>, vector<1x16x72xbf16>
    %8 = vector.shape_cast %7 : vector<1x16x72xbf16> to vector<16x72xbf16>
    %c1_8 = arith.constant 1 : index
    %c0_9 = arith.constant 0 : index
    %c0_10 = arith.constant 0 : index
    %9 = vector.load %arg3[%c1_8, %c0_9, %c0_10] : memref<3x72x64xbf16, #tpu.memory_space<vmem>>, vector<1x72x64xbf16>
    %10 = vector.shape_cast %9 : vector<1x72x64xbf16> to vector<72x64xbf16>
    %cst_11 = arith.constant dense<0.000000e+00> : vector<16x64xf32>
    %11 = tpu.matmul %8, %10, %cst_11 {dimension_numbers = #tpu.dot_dimension_numbers<[1], [0], [0], [1], [0, 0, 1, 1], [], []>} : vector<16x72xbf16>, vector<72x64xbf16>, vector<16x64xf32> -> vector<16x64xf32>
    %12 = arith.addf %6, %11 : vector<16x64xf32>
    %c0_12 = arith.constant 0 : index
    %c2 = arith.constant 2 : index
    %c0_13 = arith.constant 0 : index
    %13 = vector.load %arg2[%c0_12, %c2, %c0_13] : memref<1x18x72xbf16, #tpu.memory_space<vmem>>, vector<1x16x72xbf16>
    %14 = vector.shape_cast %13 : vector<1x16x72xbf16> to vector<16x72xbf16>
    %c2_14 = arith.constant 2 : index
    %c0_15 = arith.constant 0 : index
    %c0_16 = arith.constant 0 : index
    %15 = vector.load %arg3[%c2_14, %c0_15, %c0_16] : memref<3x72x64xbf16, #tpu.memory_space<vmem>>, vector<1x72x64xbf16>
    %16 = vector.shape_cast %15 : vector<1x72x64xbf16> to vector<72x64xbf16>
    %cst_17 = arith.constant dense<0.000000e+00> : vector<16x64xf32>
    %17 = tpu.matmul %14, %16, %cst_17 {dimension_numbers = #tpu.dot_dimension_numbers<[1], [0], [0], [1], [0, 0, 1, 1], [], []>} : vector<16x72xbf16>, vector<72x64xbf16>, vector<16x64xf32> -> vector<16x64xf32>
    %18 = arith.addf %12, %17 : vector<16x64xf32>
    %c0_18 = arith.constant 0 : index
    %c0_19 = arith.constant 0 : index
    %19 = vector.load %arg4[%c0_18, %c0_19] : memref<1x64xf32, #tpu.memory_space<vmem>>, vector<1x64xf32>
    %20 = vector.broadcast %19 : vector<1x64xf32> to vector<16x64xf32>
    %21 = arith.addf %18, %20 : vector<16x64xf32>
    %cst_20 = arith.constant 0.000000e+00 : f32
    %22 = vector.broadcast %cst_20 : f32 to vector<16x64xf32>
    %23 = arith.cmpf ogt, %21, %22 : vector<16x64xf32>
    %cst_21 = arith.constant 0.00999999977 : f32
    %24 = vector.broadcast %cst_21 : f32 to vector<16x64xf32>
    %25 = arith.mulf %24, %21 : vector<16x64xf32>
    %26 = arith.select %23, %21, %25 : vector<16x64xi1>, vector<16x64xf32>
    %27 = arith.truncf %26 : vector<16x64xf32> to vector<16x64xbf16>
    %c0_22 = arith.constant 0 : index
    %c0_23 = arith.constant 0 : index
    %c0_24 = arith.constant 0 : index
    %28 = vector.load %arg5[%c0_22, %c0_23, %c0_24] : memref<1x16x64xbf16, #tpu.memory_space<vmem>>, vector<1x16x64xbf16>
    %29 = vector.shape_cast %28 : vector<1x16x64xbf16> to vector<16x64xbf16>
    %30 = vector.shape_cast %27 : vector<16x64xbf16> to vector<1x16x64xbf16>
    tpu.vector_store %arg5[%c0_22, %c0_23, %c0_24], %30 {strides = array<i32>} : memref<1x16x64xbf16, #tpu.memory_space<vmem>>, vector<1x16x64xbf16>,
    %cst_25 = arith.constant dense<0.000000e+00> : vector<64xf32>
    %31 = vector.multi_reduction <add>, %26, %cst_25 [0] : vector<16x64xf32> to vector<64xf32>
    %32 = vector.shape_cast %31 : vector<64xf32> to vector<1x64xf32>
    %c0_26 = arith.constant 0 : index
    %c0_27 = arith.constant 0 : index
    %c0_28 = arith.constant 0 : index
    %33 = vector.load %arg6[%c0_26, %c0_27, %c0_28] : memref<1x1x64xf32, #tpu.memory_space<vmem>>, vector<1x1x64xf32>
    %34 = vector.shape_cast %33 : vector<1x1x64xf32> to vector<1x64xf32>
    %35 = vector.shape_cast %32 : vector<1x64xf32> to vector<1x1x64xf32>
    tpu.vector_store %arg6[%c0_26, %c0_27, %c0_28], %35 {strides = array<i32>} : memref<1x1x64xf32, #tpu.memory_space<vmem>>, vector<1x1x64xf32>,
    %36 = arith.mulf %26, %26 : vector<16x64xf32>
    %cst_29 = arith.constant dense<0.000000e+00> : vector<64xf32>
    %37 = vector.multi_reduction <add>, %36, %cst_29 [0] : vector<16x64xf32> to vector<64xf32>
    %38 = vector.shape_cast %37 : vector<64xf32> to vector<1x64xf32>
    %c0_30 = arith.constant 0 : index
    %c0_31 = arith.constant 0 : index
    %c0_32 = arith.constant 0 : index
    %39 = vector.load %arg7[%c0_30, %c0_31, %c0_32] : memref<1x1x64xf32, #tpu.memory_space<vmem>>, vector<1x1x64xf32>
    %40 = vector.shape_cast %39 : vector<1x1x64xf32> to vector<1x64xf32>
    %41 = vector.shape_cast %38 : vector<1x64xf32> to vector<1x1x64xf32>
    tpu.vector_store %arg7[%c0_30, %c0_31, %c0_32], %41 {strides = array<i32>} : memref<1x1x64xf32, #tpu.memory_space<vmem>>, vector<1x1x64xf32>,
    return
  }
  func.func @transform_0(%arg0: i32, %arg1: i32) -> (i32, i32, i32) {
    %c0_i32 = arith.constant 0 : i32
    %c0_i32_0 = arith.constant 0 : i32
    %c0_i32_1 = arith.constant 0 : i32
    return %arg0, %c0_i32, %c0_i32_0 : i32, i32, i32
  }
  func.func @transform_1(%arg0: i32, %arg1: i32) -> (i32, i32, i32) {
    %c0_i32 = arith.constant 0 : i32
    %c0_i32_0 = arith.constant 0 : i32
    %c0_i32_1 = arith.constant 0 : i32
    %c0_i32_2 = arith.constant 0 : i32
    return %c0_i32, %c0_i32_0, %c0_i32_1 : i32, i32, i32
  }
  func.func @transform_2(%arg0: i32, %arg1: i32) -> (i32, i32) {
    %c0_i32 = arith.constant 0 : i32
    %c0_i32_0 = arith.constant 0 : i32
    %c0_i32_1 = arith.constant 0 : i32
    return %c0_i32, %c0_i32_0 : i32, i32
  }
  func.func @transform_3(%arg0: i32, %arg1: i32) -> (i32, i32, i32) {
    %c0_i32 = arith.constant 0 : i32
    %c0_i32_0 = arith.constant 0 : i32
    return %arg0, %arg1, %c0_i32 : i32, i32, i32
  }
  func.func @transform_4(%arg0: i32, %arg1: i32) -> (i32, i32, i32) {
    %c0_i32 = arith.constant 0 : i32
    %c0_i32_0 = arith.constant 0 : i32
    return %arg0, %arg1, %c0_i32 : i32, i32, i32
  }
  func.func @transform_5(%arg0: i32, %arg1: i32) -> (i32, i32, i32) {
    %c0_i32 = arith.constant 0 : i32
    %c0_i32_0 = arith.constant 0 : i32
    return %arg0, %arg1, %c0_i32 : i32, i32, i32
  }
}

module attributes {stable_mosaic.version = 11 : i64} {
  func.func @_bn_apply_kernel(%arg0: i32, %arg1: memref<32x64xbf16, #tpu.memory_space<vmem>>, %arg2: memref<1x64xf32, #tpu.memory_space<vmem>>, %arg3: memref<1x64xf32, #tpu.memory_space<vmem>>, %arg4: memref<32x64xf32, #tpu.memory_space<vmem>>) attributes {dimension_semantics = [#tpu.dimension_semantics<parallel>], iteration_bounds = array<i64: 1>, scalar_prefetch = 0 : i64, scratch_operands = 0 : i64, tpu.core_type = #tpu.core_type<tc>, window_params = [{transform_indices = @transform_0, window_bounds = array<i64: 32, 64>}, {pipeline_mode = #tpu.pipeline_mode<synchronous>, transform_indices = @transform_1, window_bounds = array<i64: 1, 64>}, {pipeline_mode = #tpu.pipeline_mode<synchronous>, transform_indices = @transform_2, window_bounds = array<i64: 1, 64>}, {transform_indices = @transform_3, window_bounds = array<i64: 32, 64>}]} {
    %c0 = arith.constant 0 : index
    %c0_0 = arith.constant 0 : index
    %0 = vector.load %arg1[%c0, %c0_0] : memref<32x64xbf16, #tpu.memory_space<vmem>>, vector<32x64xbf16>
    %1 = arith.extf %0 : vector<32x64xbf16> to vector<32x64xf32>
    %c0_1 = arith.constant 0 : index
    %c0_2 = arith.constant 0 : index
    %2 = vector.load %arg2[%c0_1, %c0_2] : memref<1x64xf32, #tpu.memory_space<vmem>>, vector<1x64xf32>
    %3 = vector.broadcast %2 : vector<1x64xf32> to vector<32x64xf32>
    %4 = arith.mulf %1, %3 : vector<32x64xf32>
    %c0_3 = arith.constant 0 : index
    %c0_4 = arith.constant 0 : index
    %5 = vector.load %arg3[%c0_3, %c0_4] : memref<1x64xf32, #tpu.memory_space<vmem>>, vector<1x64xf32>
    %6 = vector.broadcast %5 : vector<1x64xf32> to vector<32x64xf32>
    %7 = arith.addf %4, %6 : vector<32x64xf32>
    %c0_5 = arith.constant 0 : index
    %c0_6 = arith.constant 0 : index
    %8 = vector.load %arg4[%c0_5, %c0_6] : memref<32x64xf32, #tpu.memory_space<vmem>>, vector<32x64xf32>
    tpu.vector_store %arg4[%c0_5, %c0_6], %7 {strides = array<i32>} : memref<32x64xf32, #tpu.memory_space<vmem>>, vector<32x64xf32>,
    return
  }
  func.func @transform_0(%arg0: i32) -> (i32, i32) {
    %c0_i32 = arith.constant 0 : i32
    %c0_i32_0 = arith.constant 0 : i32
    return %arg0, %c0_i32 : i32, i32
  }
  func.func @transform_1(%arg0: i32) -> (i32, i32) {
    %c0_i32 = arith.constant 0 : i32
    %c0_i32_0 = arith.constant 0 : i32
    %c0_i32_1 = arith.constant 0 : i32
    return %c0_i32, %c0_i32_0 : i32, i32
  }
  func.func @transform_2(%arg0: i32) -> (i32, i32) {
    %c0_i32 = arith.constant 0 : i32
    %c0_i32_0 = arith.constant 0 : i32
    %c0_i32_1 = arith.constant 0 : i32
    return %c0_i32, %c0_i32_0 : i32, i32
  }
  func.func @transform_3(%arg0: i32) -> (i32, i32) {
    %c0_i32 = arith.constant 0 : i32
    %c0_i32_0 = arith.constant 0 : i32
    return %arg0, %c0_i32 : i32, i32
  }
}

</mosaic_0001>

<bundles_post_ra>
// kernel: tile.38
= control target key start
LH: loop header
LB: loop body
LE: loop exit
PB: predicated region body
PF: predicated region fallthrough
CT: control target
= control target key end

     0   :  { %s40_s0 = inlined_call_operand.vmem [shape: f32[4], index: 0, kind: input, shape index: {}]   ;;  %s41_s1 = inlined_call_operand.vmem [shape: f32[32,4], index: 1, kind: output, shape index: {}]  }
   0x1   :  { %v4_v0 = vld [vmem:[%s40_s0] ss:$0 sm:$0xff] }
   0x2   :  { %5 = vst [vmem:[%s41_s1] sm:$0xff] %v4_v0  ;;  %12 = vst [vmem:[%s41_s1 + $0x8] sm:$0xff] %v4_v0 }
   0x3   :  { %13 = vst [vmem:[%s41_s1 + $0x10] sm:$0xff] %v4_v0  ;;  %14 = vst [vmem:[%s41_s1 + $0x18] sm:$0xff] %v4_v0 }

// kernel: tile.39
= control target key start
LH: loop header
LB: loop body
LE: loop exit
PB: predicated region body
PF: predicated region fallthrough
CT: control target
= control target key end

     0   :  { %s261_s10 = smov 124   ;;  %s262_s11 = smov 116   ;;  %vm3_vm0 = vcmask 31744   ;;  %vm9_vm1 = vcmask 1048544   ;;  %vm15_vm2 = vcmask 1015744   ;;  %vm21_vm3 = vcmask 982944   ;;  %s401_s0 = inlined_call_operand.vmem [shape: f32[32,4], index: 0, kind: input, shape index: {}]   ;;  %s402_s1 = inlined_call_operand.vmem [shape: f32[1,128], index: 1, kind: output, shape index: {}]  }
   0x1   :  { %v199_v0 = vld [vmem:[%s401_s0 + $0x1f] sm:$0x1]   ;;  %v201_v1 = vld [vmem:[%s401_s0 + $0x1d] sm:$0x1]   ;;  %v200_v2 = vld [vmem:[%s401_s0 + $0x1e] sm:$0x1]  }
   0x2   :  { %7 = vrot.lane.b32.xlu0 %v199_v0, %s261_s10  ;;  %19 = vrot.lane.b32.xlu1 %v201_v1, %s262_s11  ;;  %v202_v3 = vld [vmem:[%s401_s0 + $0x1c] sm:$0x1]   ;;  %s263_s16 = smov 120   ;;  %s264_s17 = smov 112   ;;  %v203_v4 = vld [vmem:[%s401_s0 + $0x1b] sm:$0x1]  }
   0x3   :  { %v204_v5 = vld [vmem:[%s401_s0 + $0x1a] sm:$0x1]   ;;  %s265_s22 = smov 108   ;;  %s266_s23 = smov 104   ;;  %v205_v6 = vld [vmem:[%s401_s0 + $0x19] sm:$0x1]  }
   0x4   :  { %v206_v7 = vld [vmem:[%s401_s0 + $0x18] sm:$0x1]   ;;  %s267_s28 = smov 100   ;;  %s268_s29 = smov 96   ;;  %v207_v8 = vld [vmem:[%s401_s0 + $0x17] sm:$0x1]  }
   0x5   :  { %v208_v9 = vld [vmem:[%s401_s0 + $0x16] sm:$0x1]   ;;  %v2_v10 = vld [vmem:[%s401_s0] sm:$0x1]   ;;  %s269_s7 = smov 92   ;;  %s270_s8 = smov 88  }
   0x6   :  { %13 = vrot.lane.b32.xlu0 %v200_v2, %s263_s16  ;;  %25 = vrot.lane.b32.xlu1 %v202_v3, %s264_s17  ;;  %4 = vst.msk [vmem:[#allocation0] sm:$0x1] %vm3_vm0, %v2_v10   ;;  %v209_v11 = vld [vmem:[%s401_s0 + $0x15] sm:$0x1]   ;;  %v210_v12 = vld [vmem:[%s401_s0 + $0x14] sm:$0x1]  }
   0x7   :  { %s271_s13 = smov 84   ;;  %s272_s14 = smov 80   ;;  %v211_v13 = vld [vmem:[%s401_s0 + $0x13] sm:$0x1]   ;;  %v212_v14 = vld [vmem:[%s401_s0 + $0x12] sm:$0x1]  }
   0x8   :  { %s273_s19 = smov 76   ;;  %s274_s20 = smov 72   ;;  %v213_v15 = vld [vmem:[%s401_s0 + $0x11] sm:$0x1]   ;;  %v214_v16 = vld [vmem:[%s401_s0 + $0x10] sm:$0x1]  }
   0x9   :  { %s275_s25 = smov 68   ;;  %s276_s26 = smov 64   ;;  %v215_v17 = vld [vmem:[%s401_s0 + $0xf] sm:$0x1]   ;;  %v216_v18 = vld [vmem:[%s401_s0 + $0xe] sm:$0x1]  }
   0xa   :  { %31 = vrot.lane.b32.xlu0 %v203_v4, %s265_s22  ;;  %37 = vrot.lane.b32.xlu1 %v204_v5, %s266_s23  ;;  %s277_s2 = smov 60   ;;  %s278_s3 = smov 56   ;;  %v217_v19 = vld [vmem:[%s401_s0 + $0xd] sm:$0x1]   ;;  %v218_v20 = vld [vmem:[%s401_s0 + $0xc] sm:$0x1]  }
   0xb   :  { %s280_s9 = smov 48   ;;  %v219_v21 = vld [vmem:[%s401_s0 + $0xb] sm:$0x1]   ;;  %v220_v22 = vld [vmem:[%s401_s0 + $0xa] sm:$0x1]   ;;  %s282_s15 = smov 40  }
   0xc   :  { %v221_v23 = vld [vmem:[%s401_s0 + $0x9] sm:$0x1]   ;;  %v222_v24 = vld [vmem:[%s401_s0 + $0x8] sm:$0x1]   ;;  %s284_s21 = smov 32   ;;  %s286_s27 = smov 24  }
   0xd   :  { %v223_v25 = vld [vmem:[%s401_s0 + $0x7] sm:$0x1]   ;;  %v224_v26 = vld [vmem:[%s401_s0 + $0x6] sm:$0x1]   ;;  %v225_v27 = vld [vmem:[%s401_s0 + $0x5] sm:$0x1]  }
   0xe   :  { %43 = vrot.lane.b32.xlu0 %v205_v6, %s267_s28  ;;  %49 = vrot.lane.b32.xlu1 %v206_v7, %s268_s29  ;;  %v226_v28 = vld [vmem:[%s401_s0 + $0x4] sm:$0x1]   ;;  %s288_s4 = smov 16   ;;  %v227_v29 = vld [vmem:[%s401_s0 + $0x3] sm:$0x1]   ;;  %s290_s10 = smov 8  }
   0xf   :  { %v228_v30 = vld [vmem:[%s401_s0 + $0x2] sm:$0x1]   ;;  %v229_v31 = vld [vmem:[%s401_s0 + $0x1] sm:$0x1]   ;;  %s291_s0 = smov 4   ;;  %vm27_vm4 = vcmask 950144  }
  0x10   :  { %vm33_vm5 = vcmask 917344   ;;  %vm39_vm6 = vcmask 884544   ;;  %vm45_vm7 = vcmask 851744   ;;  %vm51_vm8 = vcmask 818944  }
  0x11   :  { %vm57_vm9 = vcmask 786144   ;;  %vm63_vm10 = vcmask 753344   ;;  %vm69_vm11 = vcmask 720544   ;;  %vm75_vm12 = vcmask 687744  }
  0x12   :  { %55 = vrot.lane.b32.xlu0 %v207_v8, %s269_s7  ;;  %61 = vrot.lane.b32.xlu1 %v208_v9, %s270_s8  ;;  %s279_s8 = smov 52   ;;  %vm81_vm13 = vcmask 654944   ;;  %vm87_vm14 = vcmask 622144   ;;  %vm93_vm15 = vcmask 589344   ;;  %vm99_vm0 = vcmask 556544  }
  0x16   :  { %67 = vrot.lane.b32.xlu0 %v209_v11, %s271_s13  ;;  %73 = vrot.lane.b32.xlu1 %v210_v12, %s272_s14  ;;  %s281_s14 = smov 44  }
  0x1a   :  { %79 = vrot.lane.b32.xlu0 %v211_v13, %s273_s19  ;;  %85 = vrot.lane.b32.xlu1 %v212_v14, %s274_s20  ;;  %s283_s20 = smov 36  }
  0x1e   :  { %91 = vrot.lane.b32.xlu0 %v213_v15, %s275_s25  ;;  %97 = vrot.lane.b32.xlu1 %v214_v16, %s276_s26  ;;  %s285_s26 = smov 28  }
  0x22   :  { %103 = vrot.lane.b32.xlu0 %v215_v17, %s277_s2  ;;  %109 = vrot.lane.b32.xlu1 %v216_v18, %s278_s3  ;;  %s287_s3 = smov 20  }
  0x26   :  { %115 = vrot.lane.b32.xlu0 %v217_v19, %s279_s8  ;;  %121 = vrot.lane.b32.xlu1 %v218_v20, %s280_s9  ;;  %s289_s9 = smov 12  }
  0x2a   :  { %127 = vrot.lane.b32.xlu0 %v219_v21, %s281_s14  ;;  %133 = vrot.lane.b32.xlu1 %v220_v22, %s282_s15 }
  0x2e   :  { %139 = vrot.lane.b32.xlu0 %v221_v23, %s283_s20  ;;  %145 = vrot.lane.b32.xlu1 %v222_v24, %s284_s21 }
  0x32   :  { %151 = vrot.lane.b32.xlu0 %v223_v25, %s285_s26  ;;  %157 = vrot.lane.b32.xlu1 %v224_v26, %s286_s27 }
  0x36   :  { %163 = vrot.lane.b32.xlu0 %v225_v27, %s287_s3  ;;  %169 = vrot.lane.b32.xlu1 %v226_v28, %s288_s4 }
  0x3a   :  { %175 = vrot.lane.b32.xlu0 %v227_v29, %s289_s9  ;;  %181 = vrot.lane.b32.xlu1 %v228_v30, %s290_s10 }
  0x3e   :  { %187 = vrot.lane.b32.xlu0 %v229_v31, %s291_s0 }
  0x74   :  { %v8_v32 = vpop.permute.xlu0 %7   ;;  %v20_v33 = vpop.permute.xlu1 %19  }
  0x75   :  { %10 = vst.msk [vmem:[#allocation0] sm:$0x1] %vm9_vm1, %v8_v32   ;;  %vm105_vm1 = vcmask 523744  }
  0x78   :  { %v14_v34 = vpop.permute.xlu0 %13   ;;  %v26_v35 = vpop.permute.xlu1 %25  }
  0x79   :  { %16 = vst.msk [vmem:[#allocation0] sm:$0x1] %vm15_vm2, %v14_v34   ;;  %vm111_vm2 = vcmask 490944  }
  0x7a   :  { %22 = vst.msk [vmem:[#allocation0] sm:$0x1] %vm21_vm3, %v20_v33   ;;  %vm117_vm3 = vcmask 458144  }
  0x7b   :  { %28 = vst.msk [vmem:[#allocation0] sm:$0x1] %vm27_vm4, %v26_v35   ;;  %vm123_vm4 = vcmask 425344  }
  0x7c   :  { %v32_v36 = vpop.permute.xlu0 %31   ;;  %v38_v37 = vpop.permute.xlu1 %37  }
  0x7d   :  { %34 = vst.msk [vmem:[#allocation0] sm:$0x1] %vm33_vm5, %v32_v36   ;;  %vm129_vm5 = vcmask 392544  }
  0x7e   :  { %40 = vst.msk [vmem:[#allocation0] sm:$0x1] %vm39_vm6, %v38_v37   ;;  %vm135_vm6 = vcmask 359744  }
  0x80   :  { %v44_v38 = vpop.permute.xlu0 %43   ;;  %v50_v39 = vpop.permute.xlu1 %49  }
  0x81   :  { %46 = vst.msk [vmem:[#allocation0] sm:$0x1] %vm45_vm7, %v44_v38   ;;  %vm141_vm7 = vcmask 326944  }
  0x82   :  { %52 = vst.msk [vmem:[#allocation0] sm:$0x1] %vm51_vm8, %v50_v39   ;;  %vm147_vm8 = vcmask 294144  }
  0x84   :  { %v56_v40 = vpop.permute.xlu0 %55   ;;  %v62_v41 = vpop.permute.xlu1 %61  }
  0x85   :  { %58 = vst.msk [vmem:[#allocation0] sm:$0x1] %vm57_vm9, %v56_v40   ;;  %vm153_vm9 = vcmask 261344  }
  0x86   :  { %64 = vst.msk [vmem:[#allocation0] sm:$0x1] %vm63_vm10, %v62_v41   ;;  %vm159_vm10 = vcmask 228544  }
  0x88   :  { %v68_v42 = vpop.permute.xlu0 %67   ;;  %v74_v43 = vpop.permute.xlu1 %73  }
  0x89   :  { %70 = vst.msk [vmem:[#allocation0] sm:$0x1] %vm69_vm11, %v68_v42   ;;  %vm165_vm11 = vcmask 195744  }
  0x8a   :  { %76 = vst.msk [vmem:[#allocation0] sm:$0x1] %vm75_vm12, %v74_v43   ;;  %vm171_vm12 = vcmask 162944  }
  0x8c   :  { %v80_v44 = vpop.permute.xlu0 %79   ;;  %v86_v45 = vpop.permute.xlu1 %85  }
  0x8d   :  { %82 = vst.msk [vmem:[#allocation0] sm:$0x1] %vm81_vm13, %v80_v44   ;;  %vm177_vm13 = vcmask 130144  }
  0x8e   :  { %88 = vst.msk [vmem:[#allocation0] sm:$0x1] %vm87_vm14, %v86_v45   ;;  %vm183_vm14 = vcmask 97344  }
  0x90   :  { %v92_v46 = vpop.permute.xlu0 %91   ;;  %v98_v47 = vpop.permute.xlu1 %97  }
  0x91   :  { %94 = vst.msk [vmem:[#allocation0] sm:$0x1] %vm93_vm15, %v92_v46   ;;  %vm189_vm15 = vcmask 64544  }
  0x92   :  { %100 = vst.msk [vmem:[#allocation0] sm:$0x1] %vm99_vm0, %v98_v47  }
  0x94   :  { %v104_v48 = vpop.permute.xlu0 %103   ;;  %v110_v49 = vpop.permute.xlu1 %109  }
  0x95   :  { %106 = vst.msk [vmem:[#allocation0] sm:$0x1] %vm105_vm1, %v104_v48  }
  0x96   :  { %112 = vst.msk [vmem:[#allocation0] sm:$0x1] %vm111_vm2, %v110_v49  }
  0x98   :  { %v116_v50 = vpop.permute.xlu0 %115   ;;  %v122_v51 = vpop.permute.xlu1 %121  }
  0x99   :  { %118 = vst.msk [vmem:[#allocation0] sm:$0x1] %vm117_vm3, %v116_v50  }
  0x9a   :  { %124 = vst.msk [vmem:[#allocation0] sm:$0x1] %vm123_vm4, %v122_v51  }
  0x9c   :  { %v128_v52 = vpop.permute.xlu0 %127   ;;  %v134_v53 = vpop.permute.xlu1 %133  }
  0x9d   :  { %130 = vst.msk [vmem:[#allocation0] sm:$0x1] %vm129_vm5, %v128_v52  }
  0x9e   :  { %136 = vst.msk [vmem:[#allocation0] sm:$0x1] %vm135_vm6, %v134_v53  }
  0xa0   :  { %v140_v54 = vpop.permute.xlu0 %139   ;;  %v146_v55 = vpop.permute.xlu1 %145  }
  0xa1   :  { %142 = vst.msk [vmem:[#allocation0] sm:$0x1] %vm141_vm7, %v140_v54  }
  0xa2   :  { %148 = vst.msk [vmem:[#allocation0] sm:$0x1] %vm147_vm8, %v146_v55  }
  0xa4   :  { %v152_v56 = vpop.permute.xlu0 %151   ;;  %v158_v57 = vpop.permute.xlu1 %157  }
  0xa5   :  { %154 = vst.msk [vmem:[#allocation0] sm:$0x1] %vm153_vm9, %v152_v56  }
  0xa6   :  { %160 = vst.msk [vmem:[#allocation0] sm:$0x1] %vm159_vm10, %v158_v57  }
  0xa8   :  { %v164_v58 = vpop.permute.xlu0 %163   ;;  %v170_v59 = vpop.permute.xlu1 %169  }
  0xa9   :  { %166 = vst.msk [vmem:[#allocation0] sm:$0x1] %vm165_vm11, %v164_v58  }
  0xaa   :  { %172 = vst.msk [vmem:[#allocation0] sm:$0x1] %vm171_vm12, %v170_v59  }
  0xac   :  { %v176_v60 = vpop.permute.xlu0 %175   ;;  %v182_v61 = vpop.permute.xlu1 %181  }
  0xad   :  { %178 = vst.msk [vmem:[#allocation0] sm:$0x1] %vm177_vm13, %v176_v60  }
  0xae   :  { %184 = vst.msk [vmem:[#allocation0] sm:$0x1] %vm183_vm14, %v182_v61  }
  0xb0   :  { %v188_v62 = vpop.permute.xlu0 %187  }
  0xb1   :  { %190 = vst.msk [vmem:[#allocation0] sm:$0x1] %vm189_vm15, %v188_v62  }
  0xb8   :  { %v195_v63 = vld [vmem:[#allocation0] sm:$0x1] }
  0xb9   :  { %198 = vst [vmem:[%s402_s1] sm:$0x1] %v195_v63 }

// kernel: _lambda_.5
= control target key start
LH: loop header
LB: loop body
LE: loop exit
PB: predicated region body
PF: predicated region fallthrough
CT: control target
= control target key end

     0   :  { %v134_v0 = vmov 0.0   ;;  %vm135_vm0 = vmmov 0   ;;  %vm45_vm1 = vcmask 261120   ;;  %s171_s1 = inlined_call_operand.vmem [shape: bf16[32,128], index: 1, kind: input, shape index: {}]   ;;  %s172_s0 = inlined_call_operand.vmem [shape: bf16[16,32], index: 0, kind: input, shape index: {}]   ;;  %s173_s2 = inlined_call_operand.vmem [shape: f32[1,128], index: 2, kind: input, shape index: {}]   ;;  %s174_s3 = inlined_call_operand.vmem [shape: bf16[16,128], index: 3, kind: output, shape index: {}]  }
   0x1   :  { %121 = vmatprep.subr.bf16.mxu0 %v134_v0  ;;  %v131_v1 = vld [vmem:[%s171_s1 + $0x8] sm:$0xff]   ;;  %125 = vmatprep.mubr.msk.bf16.mxu0 %vm135_vm0, %v134_v0  ;;  %v132_v2 = vld [vmem:[%s171_s1] sm:$0xff]  }
   0x2   :  { %122 = vmatpush3.bf16.msra.mxu0 %v131_v1  ;;  %v133_v3 = vld [vmem:[%s172_s0] sm:$0xff]  }
   0x3   :  { %123 = vmatprep.subr.bf16.mxu0 %v134_v0  ;;  %v104_v5 = vld [vmem:[%s173_s2] ss:$0 sm:$0xff] }
   0x6   :  { %124 = vmatpush3.bf16.msra.mxu0 %v132_v2 }
   0x9   :  { %126 = vmatmul.mubr.msk.bf16.vlgmr.msra.gmra.mxu0 %vm45_vm1, %v133_v3 }
  0xc9   :  { %v83_v4 = vpop.f32.mrf.mxu0 }
  0xca   :  { %v84_v8 = vadd.f32 %v104_v5, %v83_v4 }
  0xcb   :  { %v127_v6 = vpop.f32.mrf.mxu0 }
  0xcd   :  { %v86_v7 = vpop.f32.mrf.mxu0 }
  0xce   :  { %v87_v9 = vadd.f32 %v104_v5, %v86_v7 }
  0xcf   :  { %v128_v10 = vpop.f32.mrf.mxu0 }
  0xd0   :  { %v116_v11 = vpack.c.bf16 %v87_v9, %v84_v8 }
  0xd2   :  { %117 = vst [vmem:[%s174_s3] sm:$0xff] %v116_v11  }

// kernel: tile.43
= control target key start
LH: loop header
LB: loop body
LE: loop exit
PB: predicated region body
PF: predicated region fallthrough
CT: control target
= control target key end

     0   :  { %s28_s0 = inlined_call_operand.vmem [shape: f32[4], index: 0, kind: input, shape index: {}]   ;;  %s29_s1 = inlined_call_operand.vmem [shape: f32[16,4], index: 1, kind: output, shape index: {}]  }
   0x1   :  { %v4_v0 = vld [vmem:[%s28_s0] ss:$0 sm:$0xff] }
   0x2   :  { %5 = vst [vmem:[%s29_s1] sm:$0xff] %v4_v0  ;;  %8 = vst [vmem:[%s29_s1 + $0x8] sm:$0xff] %v4_v0 }

// kernel: tile.44
= control target key start
LH: loop header
LB: loop body
LE: loop exit
PB: predicated region body
PF: predicated region fallthrough
CT: control target
= control target key end

     0   :  { %s133_s10 = smov 60   ;;  %s134_s11 = smov 52   ;;  %vm3_vm0 = vcmask 31744   ;;  %vm9_vm1 = vcmask 523744   ;;  %vm15_vm2 = vcmask 490944   ;;  %vm21_vm3 = vcmask 458144   ;;  %s209_s0 = inlined_call_operand.vmem [shape: f32[16,4], index: 0, kind: input, shape index: {}]   ;;  %s210_s1 = inlined_call_operand.vmem [shape: f32[1,64], index: 1, kind: output, shape index: {}]  }
   0x1   :  { %v103_v0 = vld [vmem:[%s209_s0 + $0xf] sm:$0x1]   ;;  %v105_v1 = vld [vmem:[%s209_s0 + $0xd] sm:$0x1]   ;;  %v104_v2 = vld [vmem:[%s209_s0 + $0xe] sm:$0x1]  }
   0x2   :  { %7 = vrot.lane.b32.xlu0 %v103_v0, %s133_s10  ;;  %19 = vrot.lane.b32.xlu1 %v105_v1, %s134_s11  ;;  %v106_v3 = vld [vmem:[%s209_s0 + $0xc] sm:$0x1]   ;;  %s135_s16 = smov 56   ;;  %s136_s17 = smov 48   ;;  %v107_v4 = vld [vmem:[%s209_s0 + $0xb] sm:$0x1]  }
   0x3   :  { %v108_v5 = vld [vmem:[%s209_s0 + $0xa] sm:$0x1]   ;;  %v2_v6 = vld [vmem:[%s209_s0] sm:$0x1]   ;;  %s137_s24 = smov 44   ;;  %s138_s25 = smov 40  }
   0x4   :  { %4 = vst.msk [vmem:[#allocation0] sm:$0x1] %vm3_vm0, %v2_v6   ;;  %v109_v7 = vld [vmem:[%s209_s0 + $0x9] sm:$0x1]   ;;  %v110_v8 = vld [vmem:[%s209_s0 + $0x8] sm:$0x1]  }
   0x5   :  { %s139_s30 = smov 36   ;;  %s140_s2 = smov 32   ;;  %v111_v9 = vld [vmem:[%s209_s0 + $0x7] sm:$0x1]   ;;  %v112_v10 = vld [vmem:[%s209_s0 + $0x6] sm:$0x1]  }
   0x6   :  { %13 = vrot.lane.b32.xlu0 %v104_v2, %s135_s16  ;;  %25 = vrot.lane.b32.xlu1 %v106_v3, %s136_s17  ;;  %s141_s7 = smov 28   ;;  %s142_s8 = smov 24   ;;  %v113_v11 = vld [vmem:[%s209_s0 + $0x5] sm:$0x1]   ;;  %v114_v12 = vld [vmem:[%s209_s0 + $0x4] sm:$0x1]  }
   0x7   :  { %s143_s13 = smov 20   ;;  %s144_s14 = smov 16   ;;  %v115_v13 = vld [vmem:[%s209_s0 + $0x3] sm:$0x1]   ;;  %v116_v14 = vld [vmem:[%s209_s0 + $0x2] sm:$0x1]  }
   0x8   :  { %s145_s19 = smov 12   ;;  %s146_s20 = smov 8   ;;  %v117_v15 = vld [vmem:[%s209_s0 + $0x1] sm:$0x1]   ;;  %vm27_vm4 = vcmask 425344   ;;  %vm33_vm5 = vcmask 392544  }
   0x9   :  { %s147_s0 = smov 4   ;;  %vm39_vm6 = vcmask 359744   ;;  %vm45_vm7 = vcmask 326944   ;;  %vm51_vm8 = vcmask 294144   ;;  %vm57_vm9 = vcmask 261344  }
   0xa   :  { %31 = vrot.lane.b32.xlu0 %v107_v4, %s137_s24  ;;  %37 = vrot.lane.b32.xlu1 %v108_v5, %s138_s25  ;;  %vm63_vm10 = vcmask 228544   ;;  %vm69_vm11 = vcmask 195744   ;;  %vm75_vm12 = vcmask 162944   ;;  %vm81_vm13 = vcmask 130144  }
   0xb   :  { %vm87_vm14 = vcmask 97344   ;;  %vm93_vm15 = vcmask 64544  }
   0xe   :  { %43 = vrot.lane.b32.xlu0 %v109_v7, %s139_s30  ;;  %49 = vrot.lane.b32.xlu1 %v110_v8, %s140_s2 }
  0x12   :  { %55 = vrot.lane.b32.xlu0 %v111_v9, %s141_s7  ;;  %61 = vrot.lane.b32.xlu1 %v112_v10, %s142_s8 }
  0x16   :  { %67 = vrot.lane.b32.xlu0 %v113_v11, %s143_s13  ;;  %73 = vrot.lane.b32.xlu1 %v114_v12, %s144_s14 }
  0x1a   :  { %79 = vrot.lane.b32.xlu0 %v115_v13, %s145_s19  ;;  %85 = vrot.lane.b32.xlu1 %v116_v14, %s146_s20 }
  0x1e   :  { %91 = vrot.lane.b32.xlu0 %v117_v15, %s147_s0 }
  0x74   :  { %v8_v16 = vpop.permute.xlu0 %7   ;;  %v20_v17 = vpop.permute.xlu1 %19  }
  0x75   :  { %10 = vst.msk [vmem:[#allocation0] sm:$0x1] %vm9_vm1, %v8_v16  }
  0x78   :  { %v14_v18 = vpop.permute.xlu0 %13   ;;  %v26_v19 = vpop.permute.xlu1 %25  }
  0x79   :  { %16 = vst.msk [vmem:[#allocation0] sm:$0x1] %vm15_vm2, %v14_v18  }
  0x7a   :  { %22 = vst.msk [vmem:[#allocation0] sm:$0x1] %vm21_vm3, %v20_v17  }
  0x7b   :  { %28 = vst.msk [vmem:[#allocation0] sm:$0x1] %vm27_vm4, %v26_v19  }
  0x7c   :  { %v32_v20 = vpop.permute.xlu0 %31   ;;  %v38_v21 = vpop.permute.xlu1 %37  }
  0x7d   :  { %34 = vst.msk [vmem:[#allocation0] sm:$0x1] %vm33_vm5, %v32_v20  }
  0x7e   :  { %40 = vst.msk [vmem:[#allocation0] sm:$0x1] %vm39_vm6, %v38_v21  }
  0x80   :  { %v44_v22 = vpop.permute.xlu0 %43   ;;  %v50_v23 = vpop.permute.xlu1 %49  }
  0x81   :  { %46 = vst.msk [vmem:[#allocation0] sm:$0x1] %vm45_vm7, %v44_v22  }
  0x82   :  { %52 = vst.msk [vmem:[#allocation0] sm:$0x1] %vm51_vm8, %v50_v23  }
  0x84   :  { %v56_v24 = vpop.permute.xlu0 %55   ;;  %v62_v25 = vpop.permute.xlu1 %61  }
  0x85   :  { %58 = vst.msk [vmem:[#allocation0] sm:$0x1] %vm57_vm9, %v56_v24  }
  0x86   :  { %64 = vst.msk [vmem:[#allocation0] sm:$0x1] %vm63_vm10, %v62_v25  }
  0x88   :  { %v68_v26 = vpop.permute.xlu0 %67   ;;  %v74_v27 = vpop.permute.xlu1 %73  }
  0x89   :  { %70 = vst.msk [vmem:[#allocation0] sm:$0x1] %vm69_vm11, %v68_v26  }
  0x8a   :  { %76 = vst.msk [vmem:[#allocation0] sm:$0x1] %vm75_vm12, %v74_v27  }
  0x8c   :  { %v80_v28 = vpop.permute.xlu0 %79   ;;  %v86_v29 = vpop.permute.xlu1 %85  }
  0x8d   :  { %82 = vst.msk [vmem:[#allocation0] sm:$0x1] %vm81_vm13, %v80_v28  }
  0x8e   :  { %88 = vst.msk [vmem:[#allocation0] sm:$0x1] %vm87_vm14, %v86_v29  }
  0x90   :  { %v92_v30 = vpop.permute.xlu0 %91  }
  0x91   :  { %94 = vst.msk [vmem:[#allocation0] sm:$0x1] %vm93_vm15, %v92_v30  }
  0x98   :  { %v99_v31 = vld [vmem:[#allocation0] sm:$0x1] }
  0x99   :  { %102 = vst [vmem:[%s210_s1] sm:$0x1] %v99_v31 }

// kernel: _lambda_.7
= control target key start
LH: loop header
LB: loop body
LE: loop exit
PB: predicated region body
PF: predicated region fallthrough
CT: control target
= control target key end

     0   :  { %vm60_vm0 = vcmask 519168   ;;  %s132_s0 = inlined_call_operand.vmem [shape: bf16[32,64], index: 0, kind: input, shape index: {}]   ;;  %s133_s1 = inlined_call_operand.vmem [shape: f32[1,64], index: 1, kind: input, shape index: {}]   ;;  %s134_s2 = inlined_call_operand.vmem [shape: f32[1,64], index: 2, kind: input, shape index: {}]   ;;  %s135_s3 = inlined_call_operand.vmem [shape: bf16[32,64], index: 3, kind: output, shape index: {}]  }
   0x1   :  { %v80_v0 = vld [vmem:[%s132_s0] sm:$0xff]   ;;  %v87_v4 = vld [vmem:[%s132_s0 + $0x8] sm:$0xff]  }
   0x2   :  { %v69_v1 = vld [vmem:[%s133_s1] ss:$0 sm:$0xff]  ;;  %v81_v2 = vunpack.c.l.bf16 %v80_v0  ;;  %v82_v3 = vunpack.c.h.bf16 %v80_v0  ;;  %v85_v6 = vunpack.c.l.bf16 %v87_v4  ;;  %v86_v7 = vunpack.c.h.bf16 %v87_v4 }
   0x3   :  { %v70_v5 = vld [vmem:[%s134_s2] ss:$0 sm:$0xff] }
   0x4   :  { %v29_v8 = vmul.f32 %v81_v2, %v69_v1  ;;  %v30_v9 = vmul.f32 %v82_v3, %v69_v1  ;;  %v31_v10 = vmul.f32 %v85_v6, %v69_v1  ;;  %v32_v11 = vmul.f32 %v86_v7, %v69_v1 }
   0x6   :  { %v40_v12 = vadd.f32 %v70_v5, %v29_v8  ;;  %v41_v13 = vadd.f32 %v70_v5, %v30_v9  ;;  %v42_v14 = vadd.f32 %v70_v5, %v31_v10  ;;  %v43_v15 = vadd.f32 %v70_v5, %v32_v11 }
   0x8   :  { %v75_v16 = vpack.c.bf16 %v40_v12, %v40_v12  ;;  %v76_v17 = vpack.c.bf16 %v41_v13, %v41_v13  ;;  %v77_v18 = vpack.c.bf16 %v42_v14, %v42_v14  ;;  %v78_v19 = vpack.c.bf16 %v43_v15, %v43_v15 }
   0xa   :  { %61 = vst.msk [vmem:[%s135_s3] sm:$0xf] %vm60_vm0, %v75_v16  ;;  %62 = vst.msk [vmem:[%s135_s3 + $0x4] sm:$0xf] %vm60_vm0, %v76_v17 }
   0xb   :  { %63 = vst.msk [vmem:[%s135_s3 + $0x8] sm:$0xf] %vm60_vm0, %v77_v18  ;;  %64 = vst.msk [vmem:[%s135_s3 + $0xc] sm:$0xf] %vm60_vm0, %v78_v19 }

// kernel: _lambda_.6
= control target key start
LH: loop header
LB: loop body
LE: loop exit
PB: predicated region body
PF: predicated region fallthrough
CT: control target
= control target key end

     0   :  { %s1495_s24 = smov 0   ;;  %s1497_s25 = smov 0   ;;  %s1715_s0 = inlined_call_operand.vmem [shape: bf16[2,18,72], index: 0, kind: input, shape index: {}]   ;;  %s1716_s1 = inlined_call_operand.vmem [shape: bf16[2,18,72], index: 1, kind: input, shape index: {}]   ;;  %s1717_s2 = inlined_call_operand.vmem [shape: bf16[3,72,64], index: 2, kind: input, shape index: {}]   ;;  %s1718_s3 = inlined_call_operand.vmem [shape: bf16[3,72,64], index: 3, kind: input, shape index: {}]   ;;  %s1719_s4 = inlined_call_operand.vmem [shape: f32[1,64], index: 4, kind: input, shape index: {}]   ;;  %s1720_s5 = inlined_call_operand.vmem [shape: bf16[2,16,64], index: 5, kind: output, shape index: {0}]   ;;  %s1721_s6 = inlined_call_operand.vmem [shape: f32[2,1,64], index: 6, kind: output, shape index: {1}]   ;;  %s1722_s7 = inlined_call_operand.vmem [shape: f32[2,1,64], index: 7, kind: output, shape index: {2}]  }
   0x1   :  { %s1499_s26 = smov 0  }
   0x2 LB: > { %s30_s27 = sadd.s32 1, %s1447_s25  ;;  %p1153_p0 = scmp.ge.s32.totalorder %s1451_s26, 1  ;;  %s1451_s26 = sphi %s1499_s26, %s18_s26   ;;  %s1447_s25 = sphi %s1497_s25, %s1724_s25   ;;  %s1443_s24 = sphi %s1495_s24, %s1723_s24  }
   0x3   : > { %p32_p1 = scmp.ge.s32.totalorder %s30_s27, 2  ;;  %p270_p2 = scmp.lt.s32.totalorder %s1451_s26, 3 }
   0x5   : > { %s1726_s27 = smov (%p32_p1, %s30_s27), 0  ;;  %p271_p3 = pnand %p1153_p0, %p270_p2 }
   0x6   : > { %p323_p4 = scmp.lt.s32.totalorder (!%p271_p3), %s1443_s24, 1 }
   0x7   : > { %274 = sbr.rel (%p271_p3) target bundleno = 297 (0x129), region = 40 }
   0xc   : > { %v1392_v0 = vld [vmem:[%s1717_s2 + $0x44] ss:$0 sps:$4 sm:$0xff]   ;;  %vm430_vm0 = vcmask 1043456   ;;  %v1453_v1 = vmov 0.0   ;;  %v1393_v2 = vld [vmem:[%s1717_s2 + $0x20] ss:$0 sps:$4 sm:$0xff]  }
   0xd   : > { %1281 = vmatprep.subr.bf16.mxu0 %v1453_v1  ;;  %1295 = vmatprep.subr.bf16.mxu1 %v1453_v1  ;;  %v432_v3 = vsel %vm430_vm0, %v1392_v0, 0  ;;  %v505_v4 = vsel %vm430_vm0, %v1393_v2, 0  ;;  %v1394_v5 = vld [vmem:[%s1717_s2 + $0x3c] sm:$0xff]   ;;  %vm1454_vm1 = vmmov 0   ;;  %v1396_v7 = vld [vmem:[%s1717_s2 + $0x34] sm:$0xff]   ;;  %s1728_s24 = smov (!%p323_p4, %s1443_s24), 1 }
   0xe   : > { %1282 = vmatpush3.bf16.msra.mxu0 %v432_v3  ;;  %1296 = vmatpush3.bf16.msra.mxu1 %v505_v4  ;;  %v1395_v6 = vld [vmem:[%s1717_s2 + $0x18] sm:$0xff]   ;;  %v1397_v8 = vld [vmem:[%s1717_s2 + $0x10] sm:$0xff]   ;;  %s1365_s17 = smul.u32 12, %s1728_s24  ;;  %v1399_v10 = vld [vmem:[%s1717_s2 + $0x8] sm:$0xff]   ;;  %vm386_vm2 = vsmask.f32 7424  ;;  %s348_s29 = scalar_lea.vmem %s1721_s6, %s1728_s24 }
   0xf   : > { %1283 = vmatprep.subr.bf16.mxu0 %v1453_v1  ;;  %1297 = vmatprep.subr.bf16.mxu1 %v1453_v1  ;;  %v1398_v9 = vld [vmem:[%s1717_s2 + $0x2c] sm:$0xff]   ;;  %v1400_v13 = vld [vmem:[%s1717_s2 + $0x24] sm:$0xff]   ;;  %v1405_v23 = vld [vmem:[%s1718_s3 + $0x20] ss:$0 sps:$4 sm:$0xff]   ;;  %vm426_vm3 = vcmask 588800   ;;  %vm562_vm4 = vcmask 1046528   ;;  %s354_s9 = scalar_lea.vmem %s1722_s7, %s1728_s24 }
  0x10   : > { %1291 = vmatprep.mubr.msk.bf16.mxu0 %vm1454_vm1, %v1453_v1  ;;  %1305 = vmatprep.mubr.msk.bf16.mxu1 %vm1454_vm1, %v1453_v1  ;;  %s1561_s28 = scalar_lea.vmem %s1715_s0, %s1365_s17  ;;  %v1404_v16 = vld [vmem:[%s1717_s2 + $0x68] ss:$0 sps:$4 sm:$0xff]   ;;  %v1401_v17 = vld [vmem:[%s1717_s2] sm:$0xff]   ;;  %s1587_s16 = scalar_lea.vmem %s1716_s1, %s1365_s17  ;;  %v689_v27 = vsel %vm430_vm0, %v1405_v23, 0  ;;  %v1407_v29 = vld [vmem:[%s1718_s3 + $0x18] sm:$0xff]   ;;  %vm959_vm6 = vcmask 519168  }
  0x11   : > { %v356_v11 = vld [vmem:[%s1561_s28] sm:$0xf]  ;;  %v357_v12 = vld [vmem:[%s1561_s28 + $0x4] sm:$0xf]  ;;  %v597_v25 = vsel %vm430_vm0, %v1404_v16, 0  ;;  %v1408_v30 = vld [vmem:[%s1717_s2 + $0x58] sm:$0xff]  }
  0x12   : > { %1284 = vmatpush3.bf16.msra.mxu0 %v1394_v5  ;;  %1298 = vmatpush3.bf16.msra.mxu1 %v1395_v6  ;;  %v1167_v14 = vcombine.low %v356_v11, %v357_v12  ;;  %v1403_v15 = vld [vmem:[%s1561_s28 + $0x8] ss:$0 sps:$4 sm:$0x11]   ;;  %v1406_v28 = vld [vmem:[%s1717_s2 + $0x60] sm:$0xff]   ;;  %v1409_v31 = vld [vmem:[%s1718_s3 + $0x10] sm:$0xff]   ;;  %s1242_s19 = sshll.u32 %s1728_s24, 3 }
  0x13   : > { %1285 = vmatprep.subr.bf16.mxu0 %v1453_v1  ;;  %1299 = vmatprep.subr.bf16.mxu1 %v1453_v1  ;;  %v395_v20 = vshll.u32 %v1403_v15, 16  ;;  %v548_v32 = vld [vmem:[%s1561_s28] sm:$0xe]  ;;  %v1410_v33 = vld [vmem:[%s1717_s2 + $0x50] sm:$0xff]   ;;  %v1411_v35 = vld [vmem:[%s1718_s3 + $0x8] sm:$0xff]   ;;  %v564_v38 = vrot.slane %v1403_v15, 1  ;;  %s341_s21 = scalar_lea.vmem %s1720_s5, %s1242_s19 }
  0x14   : > { %v388_v18 = vshrl.u32 %v1167_v14, 16  ;;  %v390_v19 = vshll.u32 %v1167_v14, 16  ;;  %v1190_v34 = vcombine.low %v548_v32, %v357_v12  ;;  %v1412_v36 = vld [vmem:[%s1717_s2 + $0x48] sm:$0xff]   ;;  %v1413_v39 = vld [vmem:[%s1718_s3] sm:$0xff]   ;;  %v1420_v51 = vld [vmem:[%s1718_s3 + $0x34] sm:$0xff]   ;;  %vm962_vm7 = vcmask 523264  }
  0x15   : > { %v397_v22 = vrot.slane %v395_v20, 1  ;;  %v1416_v40 = vld [vmem:[%s1718_s3 + $0x44] ss:$0 sps:$4 sm:$0xff]   ;;  %v1417_v41 = vld [vmem:[%s1718_s3 + $0x68] ss:$0 sps:$4 sm:$0xff]   ;;  %v1418_v48 = vld [vmem:[%s1718_s3 + $0x3c] sm:$0xff]  }
  0x16   : > { %1286 = vmatpush3.bf16.msra.mxu0 %v1396_v7  ;;  %1300 = vmatpush3.bf16.msra.mxu1 %v1397_v8  ;;  %v392_v21 = vrot.slane %v390_v19, 1  ;;  %v563_v37 = vrot.slane %v1190_v34, 1  ;;  %v1415_v43 = vld [vmem:[%s1587_s16] sm:$0xff]   ;;  %v798_v44 = vsel %vm430_vm0, %v1416_v40, 0  ;;  %v891_v47 = vsel %vm430_vm0, %v1417_v41, 0  ;;  %v1421_v54 = vld [vmem:[%s1718_s3 + $0x58] sm:$0xff]  }
  0x17   : > { %1287 = vmatprep.subr.bf16.mxu0 %v1453_v1  ;;  %1301 = vmatprep.subr.bf16.mxu1 %v1453_v1  ;;  %v734_v45 = vld [vmem:[%s1587_s16] sm:$0xf]  ;;  %v735_v46 = vld [vmem:[%s1587_s16 + $0x4] sm:$0xf]  ;;  %v1422_v56 = vld [vmem:[%s1718_s3 + $0x2c] sm:$0xff]   ;;  %vm972_vm9 = vcmask 516096  }
  0x18   : > { %v393_v24 = vor.u32 %v392_v21, %v388_v18  ;;  %v565_v42 = vsel %vm562_vm4, %v563_v37, %v564_v38  ;;  %v1213_v49 = vcombine.low %v734_v45, %v735_v46  ;;  %v1419_v50 = vld [vmem:[%s1718_s3 + $0x60] sm:$0xff]   ;;  %v1427_v52 = vld [vmem:[%s1587_s16 + $0x8] ss:$0 sps:$4 sm:$0x11]   ;;  %v1423_v60 = vld [vmem:[%s1718_s3 + $0x50] sm:$0xff]  }
  0x19   : > { %v843_v55 = vld [vmem:[%s1587_s16] sm:$0xe]  ;;  %v763_v59 = vshll.u32 %v1427_v52, 16  ;;  %v1424_v62 = vld [vmem:[%s1718_s3 + $0x24] sm:$0xff]   ;;  %v858_v4 = vrot.slane %v1427_v52, 1 }
  0x1a   : > { %1288 = vmatpush3.bf16.msra.mxu0 %v1398_v9  ;;  %1302 = vmatpush3.bf16.msra.mxu1 %v1399_v10  ;;  %v398_v26 = vsel %vm386_vm2, %v393_v24, %v397_v22  ;;  %v758_v53 = vshll.u32 %v1213_v49, 16  ;;  %v756_v57 = vshrl.u32 %v1213_v49, 16  ;;  %v1230_v61 = vcombine.low %v843_v55, %v735_v46  ;;  %v1425_v2 = vld [vmem:[%s1718_s3 + $0x48] sm:$0xff]  }
  0x1b   : > { %1289 = vmatprep.subr.bf16.mxu0 %v1453_v1  ;;  %1303 = vmatprep.subr.bf16.mxu1 %v1453_v1  ;;  %v765_v0 = vrot.slane %v763_v59, 1 }
  0x1c   : > { %v760_v58 = vrot.slane %v758_v53, 1  ;;  %v857_v3 = vrot.slane %v1230_v61, 1 }
  0x1e   : > { %1290 = vmatpush3.bf16.msra.mxu0 %v1400_v13  ;;  %1304 = vmatpush3.bf16.msra.mxu1 %v1401_v17  ;;  %v761_v63 = vor.u32 %v760_v58, %v756_v57  ;;  %v859_v6 = vsel %vm562_vm4, %v857_v3, %v858_v4 }
  0x1f   : > { %1309 = vmatprep.subr.bf16.mxu0 %v1453_v1  ;;  %1323 = vmatprep.subr.bf16.mxu1 %v1453_v1 }
  0x20   : > { %v766_v5 = vsel %vm386_vm2, %v761_v63, %v765_v0 }
  0x21   : > { %1292 = vmatmul.mubr.msk.bf16.vlgmr.msra.gmra.mxu0 %vm426_vm3, %v398_v26  ;;  %1306 = vmatmul.mubr.msk.bf16.vlgmr.msra.gmra.mxu1 %vm426_vm3, %v1167_v14 }
  0x22   : > { %1310 = vmatpush3.bf16.msra.mxu0 %v597_v25  ;;  %1324 = vmatpush3.bf16.msra.mxu1 %v689_v27 }
  0x23   : > { %1311 = vmatprep.subr.bf16.mxu0 %v1453_v1  ;;  %1325 = vmatprep.subr.bf16.mxu1 %v1453_v1 }
  0x24   : > { %1319 = vmatprep.mubr.msk.bf16.mxu0 %vm1454_vm1, %v1453_v1  ;;  %1333 = vmatprep.mubr.msk.bf16.mxu1 %vm1454_vm1, %v1453_v1 }
  0x26   : > { %1312 = vmatpush3.bf16.msra.mxu0 %v1406_v28  ;;  %1326 = vmatpush3.bf16.msra.mxu1 %v1407_v29 }
  0x27   : > { %1313 = vmatprep.subr.bf16.mxu0 %v1453_v1  ;;  %1327 = vmatprep.subr.bf16.mxu1 %v1453_v1 }
  0x2a   : > { %1314 = vmatpush3.bf16.msra.mxu0 %v1408_v30  ;;  %1328 = vmatpush3.bf16.msra.mxu1 %v1409_v31  ;;  %v1237_v30 = vld [vmem:[%s1719_s4] ss:$0 sm:$0xff] }
  0x2b   : > { %1315 = vmatprep.subr.bf16.mxu0 %v1453_v1  ;;  %1329 = vmatprep.subr.bf16.mxu1 %v1453_v1 }
  0x2e   : > { %1316 = vmatpush3.bf16.msra.mxu0 %v1410_v33  ;;  %1330 = vmatpush3.bf16.msra.mxu1 %v1411_v35 }
  0x2f   : > { %1317 = vmatprep.subr.bf16.mxu0 %v1453_v1  ;;  %1331 = vmatprep.subr.bf16.mxu1 %v1453_v1 }
  0x32   : > { %1318 = vmatpush3.bf16.msra.mxu0 %v1412_v36  ;;  %1332 = vmatpush3.bf16.msra.mxu1 %v1413_v39 }
  0x33   : > { %1337 = vmatprep.subr.bf16.mxu0 %v1453_v1  ;;  %1351 = vmatprep.subr.bf16.mxu1 %v1453_v1 }
  0x35   : > { %1320 = vmatmul.mubr.msk.bf16.vlgmr.msra.gmra.mxu0 %vm426_vm3, %v565_v42  ;;  %1334 = vmatmul.mubr.msk.bf16.vlgmr.msra.gmra.mxu1 %vm426_vm3, %v1415_v43 }
  0x36   : > { %1338 = vmatpush3.bf16.msra.mxu0 %v798_v44  ;;  %1352 = vmatpush3.bf16.msra.mxu1 %v891_v47 }
  0x37   : > { %1339 = vmatprep.subr.bf16.mxu0 %v1453_v1  ;;  %1353 = vmatprep.subr.bf16.mxu1 %v1453_v1 }
  0x38   : > { %1347 = vmatprep.mubr.msk.bf16.mxu0 %vm1454_vm1, %v1453_v1  ;;  %1361 = vmatprep.mubr.msk.bf16.mxu1 %vm1454_vm1, %v1453_v1 }
  0x3a   : > { %1340 = vmatpush3.bf16.msra.mxu0 %v1418_v48  ;;  %1354 = vmatpush3.bf16.msra.mxu1 %v1419_v50 }
  0x3b   : > { %1341 = vmatprep.subr.bf16.mxu0 %v1453_v1  ;;  %1355 = vmatprep.subr.bf16.mxu1 %v1453_v1 }
  0x3e   : > { %1342 = vmatpush3.bf16.msra.mxu0 %v1420_v51  ;;  %1356 = vmatpush3.bf16.msra.mxu1 %v1421_v54 }
  0x3f   : > { %1343 = vmatprep.subr.bf16.mxu0 %v1453_v1  ;;  %1357 = vmatprep.subr.bf16.mxu1 %v1453_v1 }
  0x42   : > { %1344 = vmatpush3.bf16.msra.mxu0 %v1422_v56  ;;  %1358 = vmatpush3.bf16.msra.mxu1 %v1423_v60 }
  0x43   : > { %1345 = vmatprep.subr.bf16.mxu0 %v1453_v1  ;;  %1359 = vmatprep.subr.bf16.mxu1 %v1453_v1 }
  0x46   : > { %1346 = vmatpush3.bf16.msra.mxu0 %v1424_v62  ;;  %1360 = vmatpush3.bf16.msra.mxu1 %v1425_v2 }
  0x49   : > { %1348 = vmatmul.mubr.msk.bf16.vlgmr.msra.gmra.mxu0 %vm426_vm3, %v766_v5  ;;  %1362 = vmatmul.mubr.msk.bf16.vlgmr.msra.gmra.mxu1 %vm426_vm3, %v859_v6 }
  0xe1   : > { %v468_v7 = vpop.f32.mrf.mxu0  ;;  %v541_v8 = vpop.f32.mrf.mxu1 }
  0xe2   : > { %v542_v22 = vadd.f32 %v541_v8, %v468_v7 }
  0xe3   : > { %v1293_v9 = vpop.f32.mrf.mxu0  ;;  %v1307_v10 = vpop.f32.mrf.mxu1 }
  0xe5   : > { %v471_v11 = vpop.f32.mrf.mxu0  ;;  %v544_v12 = vpop.f32.mrf.mxu1 }
  0xe6   : > { %v545_v24 = vadd.f32 %v544_v12, %v471_v11 }
  0xe7   : > { %v1294_v13 = vpop.f32.mrf.mxu0  ;;  %v1308_v14 = vpop.f32.mrf.mxu1 }
  0xf5   : > { %v633_v15 = vpop.f32.mrf.mxu0  ;;  %v725_v1 = vpop.f32.mrf.mxu1 }
  0xf6   : > { %v640_v23 = vadd.f32 %v633_v15, %v542_v22 }
  0xf7   : > { %v1321_v16 = vpop.f32.mrf.mxu0  ;;  %v1335_v17 = vpop.f32.mrf.mxu1 }
  0xf8   : > { %v732_v25 = vadd.f32 %v725_v1, %v640_v23 }
  0xf9   : > { %v636_v18 = vpop.f32.mrf.mxu0  ;;  %v728_v19 = vpop.f32.mrf.mxu1 }
  0xfa   : > { %v641_v26 = vadd.f32 %v636_v18, %v545_v24 }
  0xfb   : > { %v1322_v20 = vpop.f32.mrf.mxu0  ;;  %v1336_v21 = vpop.f32.mrf.mxu1 }
  0xfc   : > { %v733_v32 = vadd.f32 %v728_v19, %v641_v26 }
 0x109   : > { %v834_v27 = vpop.f32.mrf.mxu0  ;;  %v927_v29 = vpop.f32.mrf.mxu1 }
 0x10a   : > { %v841_v28 = vadd.f32 %v834_v27, %v732_v25 }
 0x10b   : > { %v1349_v31 = vpop.f32.mrf.mxu0  ;;  %v1363_v34 = vpop.f32.mrf.mxu1 }
 0x10c   : > { %v934_v33 = vadd.f32 %v927_v29, %v841_v28 }
 0x10d   : > { %v837_v35 = vpop.f32.mrf.mxu0  ;;  %v930_v38 = vpop.f32.mrf.mxu1 }
 0x10e   : > { %v943_v36 = vadd.f32 %v1237_v30, %v934_v33  ;;  %v842_v37 = vadd.f32 %v837_v35, %v733_v32 }
 0x10f   : > { %v1350_v39 = vpop.f32.mrf.mxu0  ;;  %v1364_v42 = vpop.f32.mrf.mxu1 }
 0x110   : > { %vm945_vm5 = vcmp.gt.f32.partialorder %v943_v36, 0.0  ;;  %v947_v40 = vmul.f32 0.01, %v943_v36  ;;  %v935_v41 = vadd.f32 %v930_v38, %v842_v37 }
 0x112   : > { %v949_v43 = vsel %vm945_vm5, %v943_v36, %v947_v40  ;;  %v944_v44 = vadd.f32 %v1237_v30, %v935_v41 }
 0x113   : > { %v1243_v45 = vpack.c.bf16 %v949_v43, %v949_v43  ;;  %v974_v47 = vmul.f32 %v949_v43, %v949_v43  ;;  %v963_v49 = vsel %vm962_vm7, %v949_v43, 0.0 }
 0x114   : > { %vm946_vm8 = vcmp.gt.f32.partialorder %v944_v44, 0.0  ;;  %v948_v46 = vmul.f32 0.01, %v944_v44 }
 0x115   : > { %960 = vst.msk [vmem:[%s341_s21] sm:$0xf] %vm959_vm6, %v1243_v45  ;;  %v976_v54 = vsel %vm962_vm7, %v974_v47, 0.0 }
 0x116   : > { %v950_v48 = vsel %vm946_vm8, %v944_v44, %v948_v46 }
 0x117   : > { %v1244_v50 = vpack.c.bf16 %v950_v48, %v950_v48  ;;  %v964_v51 = vsel %vm962_vm7, %v950_v48, 0.0  ;;  %v975_v52 = vmul.f32 %v950_v48, %v950_v48 }
 0x118   : > { %v965_v53 = vadd.f32 %v964_v51, %v963_v49 }
 0x119   : > { %961 = vst.msk [vmem:[%s341_s21 + $0x4] sm:$0xf] %vm959_vm6, %v1244_v50  ;;  %v977_v55 = vsel %vm962_vm7, %v975_v52, 0.0 }
 0x11a   : > { %v966_v56 = vrot.slane %v965_v53, 4  ;;  %v978_v57 = vadd.f32 %v977_v55, %v976_v54 }
 0x11c   : > { %v967_v58 = vadd.f32 %v966_v56, %v965_v53  ;;  %v979_v59 = vrot.slane %v978_v57, 4 }
 0x11e   : > { %v968_v60 = vrot.slane %v967_v58, 2  ;;  %v980_v61 = vadd.f32 %v979_v59, %v978_v57 }
 0x120   : > { %v969_v62 = vadd.f32 %v968_v60, %v967_v58  ;;  %v981_v63 = vrot.slane %v980_v61, 2 }
 0x122   : > { %v970_v0 = vrot.slane %v969_v62, 1  ;;  %v982_v2 = vadd.f32 %v981_v63, %v980_v61 }
 0x124   : > { %v971_v3 = vadd.f32 %v970_v0, %v969_v62  ;;  %v983_v4 = vrot.slane %v982_v2, 1 }
 0x126   : > { %973 = vst.msk [vmem:[%s348_s29] sm:$0x1] %vm972_vm9, %v971_v3  ;;  %v984_v5 = vadd.f32 %v983_v4, %v982_v2 }
 0x128   : > { %985 = vst.msk [vmem:[%s354_s9] sm:$0x1] %vm972_vm9, %v984_v5 }
 0x129 PF: > { %s18_s26 = sadd.s32 1, %s1451_s26   ;;  %s1723_s24 = smov %s1447_s25 }
 0x12a   : > { %p15_p5 = scmp.ge.s32.totalorder %s18_s26, 4   ;;  %s1724_s25 = smov %s1726_s27 }
 0x12c   :  { %17 = sbr.rel (!%p15_p5) target bundleno = 2 (0x2), region = 101 }

// kernel: _lambda_.9
= control target key start
LH: loop header
LB: loop body
LE: loop exit
PB: predicated region body
PF: predicated region fallthrough
CT: control target
= control target key end

     0   :  { %vm44_vm0 = vcmask 523264   ;;  %s108_s0 = inlined_call_operand.vmem [shape: bf16[32,64], index: 0, kind: input, shape index: {}]   ;;  %s109_s1 = inlined_call_operand.vmem [shape: f32[1,64], index: 1, kind: input, shape index: {}]   ;;  %s110_s2 = inlined_call_operand.vmem [shape: f32[1,64], index: 2, kind: input, shape index: {}]   ;;  %s111_s3 = inlined_call_operand.vmem [shape: f32[32,64], index: 3, kind: output, shape index: {}]  }
   0x1   :  { %v56_v0 = vld [vmem:[%s108_s0] sm:$0xff]   ;;  %v63_v4 = vld [vmem:[%s108_s0 + $0x8] sm:$0xff]  }
   0x2   :  { %v53_v1 = vld [vmem:[%s109_s1] ss:$0 sm:$0xff]  ;;  %v57_v2 = vunpack.c.l.bf16 %v56_v0  ;;  %v58_v3 = vunpack.c.h.bf16 %v56_v0  ;;  %v61_v6 = vunpack.c.l.bf16 %v63_v4  ;;  %v62_v7 = vunpack.c.h.bf16 %v63_v4 }
   0x3   :  { %v54_v5 = vld [vmem:[%s110_s2] ss:$0 sm:$0xff] }
   0x4   :  { %v29_v8 = vmul.f32 %v57_v2, %v53_v1  ;;  %v30_v9 = vmul.f32 %v58_v3, %v53_v1  ;;  %v31_v10 = vmul.f32 %v61_v6, %v53_v1  ;;  %v32_v11 = vmul.f32 %v62_v7, %v53_v1 }
   0x6   :  { %v40_v12 = vadd.f32 %v54_v5, %v29_v8  ;;  %v41_v13 = vadd.f32 %v54_v5, %v30_v9  ;;  %v42_v14 = vadd.f32 %v54_v5, %v31_v10  ;;  %v43_v15 = vadd.f32 %v54_v5, %v32_v11 }
   0x8   :  { %45 = vst.msk [vmem:[%s111_s3] sm:$0xff] %vm44_vm0, %v40_v12  ;;  %46 = vst.msk [vmem:[%s111_s3 + $0x8] sm:$0xff] %vm44_vm0, %v41_v13 }
   0x9   :  { %47 = vst.msk [vmem:[%s111_s3 + $0x10] sm:$0xff] %vm44_vm0, %v42_v14  ;;  %48 = vst.msk [vmem:[%s111_s3 + $0x18] sm:$0xff] %vm44_vm0, %v43_v15 }

// kernel: _lambda_.8
= control target key start
LH: loop header
LB: loop body
LE: loop exit
PB: predicated region body
PF: predicated region fallthrough
CT: control target
= control target key end

     0   :  { %s985_s18 = smov 0   ;;  %s987_s19 = smov 0   ;;  %s1115_s0 = inlined_call_operand.vmem [shape: bf16[2,18,72], index: 0, kind: input, shape index: {}]   ;;  %s1116_s1 = inlined_call_operand.vmem [shape: bf16[3,72,64], index: 1, kind: input, shape index: {}]   ;;  %s1117_s2 = inlined_call_operand.vmem [shape: f32[1,64], index: 2, kind: input, shape index: {}]   ;;  %s1118_s3 = inlined_call_operand.vmem [shape: bf16[2,16,64], index: 3, kind: output, shape index: {0}]   ;;  %s1119_s4 = inlined_call_operand.vmem [shape: f32[2,1,64], index: 4, kind: output, shape index: {1}]   ;;  %s1120_s5 = inlined_call_operand.vmem [shape: f32[2,1,64], index: 5, kind: output, shape index: {2}]  }
   0x1   :  { %s989_s20 = smov 0  }
   0x2 LB: > { %s28_s21 = sadd.s32 1, %s947_s19  ;;  %p773_p0 = scmp.ge.s32.totalorder %s951_s20, 1  ;;  %s951_s20 = sphi %s989_s20, %s16_s20   ;;  %s947_s19 = sphi %s987_s19, %s1122_s19   ;;  %s943_s18 = sphi %s985_s18, %s1121_s18  }
   0x3   : > { %p30_p1 = scmp.ge.s32.totalorder %s28_s21, 2  ;;  %p210_p2 = scmp.lt.s32.totalorder %s951_s20, 3 }
   0x5   : > { %s1124_s21 = smov (%p30_p1, %s28_s21), 0  ;;  %p211_p3 = pnand %p773_p0, %p210_p2 }
   0x6   : > { %p254_p4 = scmp.lt.s32.totalorder (!%p211_p3), %s943_s18, 1 }
   0x7   : > { %214 = sbr.rel (%p211_p3) target bundleno = 275 (0x113), region = 32 }
   0xc   : > { %v911_v0 = vld [vmem:[%s1116_s1 + $0x44] ss:$0 sps:$4 sm:$0xff]   ;;  %vm356_vm0 = vcmask 1043456   ;;  %v953_v1 = vmov 0.0   ;;  %v912_v2 = vld [vmem:[%s1116_s1 + $0x20] ss:$0 sps:$4 sm:$0xff]  }
   0xd   : > { %842 = vmatprep.subr.bf16.mxu0 %v953_v1  ;;  %856 = vmatprep.subr.bf16.mxu1 %v953_v1  ;;  %v358_v3 = vsel %vm356_vm0, %v911_v0, 0  ;;  %v431_v4 = vsel %vm356_vm0, %v912_v2, 0  ;;  %v913_v5 = vld [vmem:[%s1116_s1 + $0x3c] sm:$0xff]   ;;  %vm954_vm1 = vmmov 0   ;;  %v915_v7 = vld [vmem:[%s1116_s1 + $0x34] sm:$0xff]   ;;  %s1126_s18 = smov (!%p254_p4, %s943_s18), 1 }
   0xe   : > { %843 = vmatpush3.bf16.msra.mxu0 %v358_v3  ;;  %857 = vmatpush3.bf16.msra.mxu1 %v431_v4  ;;  %v914_v6 = vld [vmem:[%s1116_s1 + $0x18] sm:$0xff]   ;;  %v916_v8 = vld [vmem:[%s1116_s1 + $0x10] sm:$0xff]   ;;  %s884_s9 = smul.u32 12, %s1126_s18  ;;  %v918_v10 = vld [vmem:[%s1116_s1 + $0x8] sm:$0xff]   ;;  %vm312_vm2 = vsmask.f32 7424  ;;  %s274_s22 = scalar_lea.vmem %s1119_s4, %s1126_s18 }
   0xf   : > { %844 = vmatprep.subr.bf16.mxu0 %v953_v1  ;;  %858 = vmatprep.subr.bf16.mxu1 %v953_v1  ;;  %v917_v9 = vld [vmem:[%s1116_s1 + $0x2c] sm:$0xff]   ;;  %v919_v15 = vld [vmem:[%s1116_s1 + $0x24] sm:$0xff]   ;;  %vm352_vm3 = vcmask 588800   ;;  %v925_v27 = vld [vmem:[%s1116_s1 + $0x58] sm:$0xff]   ;;  %vm488_vm4 = vcmask 1046528   ;;  %s821_s12 = sshll.u32 %s1126_s18, 3  ;;  %s280_s25 = scalar_lea.vmem %s1120_s5, %s1126_s18 }
  0x10   : > { %852 = vmatprep.mubr.msk.bf16.mxu0 %vm954_vm1, %v953_v1  ;;  %866 = vmatprep.mubr.msk.bf16.mxu1 %vm954_vm1, %v953_v1  ;;  %s1049_s16 = scalar_lea.vmem %s1115_s0, %s884_s9  ;;  %v920_v19 = vld [vmem:[%s1116_s1] sm:$0xff]   ;;  %v923_v20 = vld [vmem:[%s1116_s1 + $0x68] ss:$0 sps:$4 sm:$0xff]   ;;  %v926_v29 = vld [vmem:[%s1116_s1 + $0x50] sm:$0xff]   ;;  %s267_s15 = scalar_lea.vmem %s1118_s3, %s821_s12  ;;  %vm591_vm6 = vcmask 519168   ;;  %vm594_vm7 = vcmask 523264  }
  0x11   : > { %v282_v11 = vld [vmem:[%s1049_s16] sm:$0xf]  ;;  %v283_v12 = vld [vmem:[%s1049_s16 + $0x4] sm:$0xf]  ;;  %v523_v24 = vsel %vm356_vm0, %v923_v20, 0  ;;  %v927_v31 = vld [vmem:[%s1116_s1 + $0x48] sm:$0xff]  }
  0x12   : > { %845 = vmatpush3.bf16.msra.mxu0 %v913_v5  ;;  %859 = vmatpush3.bf16.msra.mxu1 %v914_v6  ;;  %v786_v13 = vcombine.low %v282_v11, %v283_v12  ;;  %v922_v14 = vld [vmem:[%s1049_s16 + $0x8] ss:$0 sps:$4 sm:$0x11]   ;;  %v924_v26 = vld [vmem:[%s1116_s1 + $0x60] sm:$0xff]   ;;  %vm604_vm9 = vcmask 516096  }
  0x13   : > { %846 = vmatprep.subr.bf16.mxu0 %v953_v1  ;;  %860 = vmatprep.subr.bf16.mxu1 %v953_v1  ;;  %v321_v18 = vshll.u32 %v922_v14, 16  ;;  %v474_v28 = vld [vmem:[%s1049_s16] sm:$0xe]  ;;  %v490_v33 = vrot.slane %v922_v14, 1  ;;  %v816_v45 = vld [vmem:[%s1117_s2] ss:$0 sm:$0xff] }
  0x14   : > { %v314_v16 = vshrl.u32 %v786_v13, 16  ;;  %v316_v17 = vshll.u32 %v786_v13, 16  ;;  %v809_v30 = vcombine.low %v474_v28, %v283_v12 }
  0x15   : > { %v323_v22 = vrot.slane %v321_v18, 1 }
  0x16   : > { %847 = vmatpush3.bf16.msra.mxu0 %v915_v7  ;;  %861 = vmatpush3.bf16.msra.mxu1 %v916_v8  ;;  %v318_v21 = vrot.slane %v316_v17, 1  ;;  %v489_v32 = vrot.slane %v809_v30, 1 }
  0x17   : > { %848 = vmatprep.subr.bf16.mxu0 %v953_v1  ;;  %862 = vmatprep.subr.bf16.mxu1 %v953_v1 }
  0x18   : > { %v319_v23 = vor.u32 %v318_v21, %v314_v16  ;;  %v491_v34 = vsel %vm488_vm4, %v489_v32, %v490_v33 }
  0x1a   : > { %849 = vmatpush3.bf16.msra.mxu0 %v917_v9  ;;  %863 = vmatpush3.bf16.msra.mxu1 %v918_v10  ;;  %v324_v25 = vsel %vm312_vm2, %v319_v23, %v323_v22 }
  0x1b   : > { %850 = vmatprep.subr.bf16.mxu0 %v953_v1  ;;  %864 = vmatprep.subr.bf16.mxu1 %v953_v1 }
  0x1e   : > { %851 = vmatpush3.bf16.msra.mxu0 %v919_v15  ;;  %865 = vmatpush3.bf16.msra.mxu1 %v920_v19 }
  0x1f   : > { %870 = vmatprep.subr.bf16.mxu0 %v953_v1 }
  0x21   : > { %853 = vmatmul.mubr.msk.bf16.vlgmr.msra.gmra.mxu0 %vm352_vm3, %v324_v25  ;;  %867 = vmatmul.mubr.msk.bf16.vlgmr.msra.gmra.mxu1 %vm352_vm3, %v786_v13 }
  0x22   : > { %871 = vmatpush3.bf16.msra.mxu0 %v523_v24  ;;  %880 = vmatprep.mubr.msk.bf16.mxu0 %vm954_vm1, %v953_v1 }
  0x23   : > { %872 = vmatprep.subr.bf16.mxu0 %v953_v1 }
  0x26   : > { %873 = vmatpush3.bf16.msra.mxu0 %v924_v26 }
  0x27   : > { %874 = vmatprep.subr.bf16.mxu0 %v953_v1 }
  0x2a   : > { %875 = vmatpush3.bf16.msra.mxu0 %v925_v27 }
  0x2b   : > { %876 = vmatprep.subr.bf16.mxu0 %v953_v1 }
  0x2e   : > { %877 = vmatpush3.bf16.msra.mxu0 %v926_v29 }
  0x2f   : > { %878 = vmatprep.subr.bf16.mxu0 %v953_v1 }
  0x32   : > { %879 = vmatpush3.bf16.msra.mxu0 %v927_v31 }
  0x35   : > { %881 = vmatmul.mubr.msk.bf16.vlgmr.msra.gmra.mxu0 %vm352_vm3, %v491_v34 }
  0xe1   : > { %v394_v35 = vpop.f32.mrf.mxu0  ;;  %v467_v36 = vpop.f32.mrf.mxu1 }
  0xe2   : > { %v468_v43 = vadd.f32 %v467_v36, %v394_v35 }
  0xe3   : > { %v854_v37 = vpop.f32.mrf.mxu0  ;;  %v868_v38 = vpop.f32.mrf.mxu1 }
  0xe5   : > { %v397_v39 = vpop.f32.mrf.mxu0  ;;  %v470_v40 = vpop.f32.mrf.mxu1 }
  0xe6   : > { %v471_v48 = vadd.f32 %v470_v40, %v397_v39 }
  0xe7   : > { %v855_v41 = vpop.f32.mrf.mxu0  ;;  %v869_v42 = vpop.f32.mrf.mxu1 }
  0xf5   : > { %v559_v44 = vpop.f32.mrf.mxu0 }
  0xf6   : > { %v566_v46 = vadd.f32 %v559_v44, %v468_v43 }
  0xf7   : > { %v882_v47 = vpop.f32.mrf.mxu0 }
  0xf8   : > { %v575_v49 = vadd.f32 %v816_v45, %v566_v46 }
  0xf9   : > { %v562_v50 = vpop.f32.mrf.mxu0 }
  0xfa   : > { %vm577_vm5 = vcmp.gt.f32.partialorder %v575_v49, 0.0  ;;  %v579_v51 = vmul.f32 0.01, %v575_v49  ;;  %v567_v52 = vadd.f32 %v562_v50, %v471_v48 }
  0xfb   : > { %v883_v53 = vpop.f32.mrf.mxu0 }
  0xfc   : > { %v581_v54 = vsel %vm577_vm5, %v575_v49, %v579_v51  ;;  %v576_v55 = vadd.f32 %v816_v45, %v567_v52 }
  0xfd   : > { %v822_v56 = vpack.c.bf16 %v581_v54, %v581_v54  ;;  %v606_v58 = vmul.f32 %v581_v54, %v581_v54  ;;  %v595_v60 = vsel %vm594_vm7, %v581_v54, 0.0 }
  0xfe   : > { %vm578_vm8 = vcmp.gt.f32.partialorder %v576_v55, 0.0  ;;  %v580_v57 = vmul.f32 0.01, %v576_v55 }
  0xff   : > { %592 = vst.msk [vmem:[%s267_s15] sm:$0xf] %vm591_vm6, %v822_v56  ;;  %v608_v1 = vsel %vm594_vm7, %v606_v58, 0.0 }
 0x100   : > { %v582_v59 = vsel %vm578_vm8, %v576_v55, %v580_v57 }
 0x101   : > { %v823_v61 = vpack.c.bf16 %v582_v59, %v582_v59  ;;  %v596_v62 = vsel %vm594_vm7, %v582_v59, 0.0  ;;  %v607_v63 = vmul.f32 %v582_v59, %v582_v59 }
 0x102   : > { %v597_v0 = vadd.f32 %v596_v62, %v595_v60 }
 0x103   : > { %593 = vst.msk [vmem:[%s267_s15 + $0x4] sm:$0xf] %vm591_vm6, %v823_v61  ;;  %v609_v2 = vsel %vm594_vm7, %v607_v63, 0.0 }
 0x104   : > { %v598_v3 = vrot.slane %v597_v0, 4  ;;  %v610_v4 = vadd.f32 %v609_v2, %v608_v1 }
 0x106   : > { %v599_v5 = vadd.f32 %v598_v3, %v597_v0  ;;  %v611_v6 = vrot.slane %v610_v4, 4 }
 0x108   : > { %v600_v7 = vrot.slane %v599_v5, 2  ;;  %v612_v8 = vadd.f32 %v611_v6, %v610_v4 }
 0x10a   : > { %v601_v9 = vadd.f32 %v600_v7, %v599_v5  ;;  %v613_v10 = vrot.slane %v612_v8, 2 }
 0x10c   : > { %v602_v11 = vrot.slane %v601_v9, 1  ;;  %v614_v12 = vadd.f32 %v613_v10, %v612_v8 }
 0x10e   : > { %v603_v13 = vadd.f32 %v602_v11, %v601_v9  ;;  %v615_v14 = vrot.slane %v614_v12, 1 }
 0x110   : > { %605 = vst.msk [vmem:[%s274_s22] sm:$0x1] %vm604_vm9, %v603_v13  ;;  %v616_v15 = vadd.f32 %v615_v14, %v614_v12 }
 0x112   : > { %617 = vst.msk [vmem:[%s280_s25] sm:$0x1] %vm604_vm9, %v616_v15 }
 0x113 PF: > { %s16_s20 = sadd.s32 1, %s951_s20   ;;  %s1121_s18 = smov %s947_s19 }
 0x114   : > { %p13_p5 = scmp.ge.s32.totalorder %s16_s20, 4   ;;  %s1122_s19 = smov %s1124_s21 }
 0x116   :  { %15 = sbr.rel (!%p13_p5) target bundleno = 2 (0x2), region = 88 }

</bundles_post_ra>
